<compile_context>
chip_gen: v7x
topology: tpu7x:2x2x1
jax: 0.10.0
libtpu: 0.0.40
codegen_flags: <defaults>
</compile_context>

<pallas_src>
import functools

import jax
import jax.numpy as jnp
import numpy as np
from jax.experimental import pallas as pl
from jax.experimental.pallas import tpu as pltpu


# ------------------------------ fused Pallas kernel ------------------------------ #

def _fused_block_kernel(x_ref, w1_ref, b1_ref, dwk_ref, b2_ref, w3_ref, b3_ref,
                        se1_ref, se2_ref, she_ref, sho_ref,
                        o_ref, yp_ref, *, H, W, pad_left):
    """One batch element of InvertedResidual (stride=1).

    x_ref:   (C, H*W)      full input (both channel halves)
    w1_ref:  (Cb, Cb)      1x1 conv #1, BN1 scale folded in
    b1_ref:  (Cb, 1)       BN1 bias
    dwk_ref: (Cb, 9)       depthwise 3x3 taps (kh*3+kw), BN2 scale folded in
    b2_ref:  (Cb, 1)       BN2 bias
    w3_ref:  (Cb, Cb)      1x1 conv #2, BN3 scale folded in
    b3_ref:  (Cb, 1)       BN3 bias
    se1_ref: (Cr, Cb)      SE fc1
    se2_ref: (Cb, Cr)      SE fc2
    she_ref: (C, Cb)       scatter matrix: even output channels <- x1
    sho_ref: (C, Cb)       scatter matrix: odd  output channels <- branch2
    o_ref:   (C, H*W)      shuffled output
    yp_ref:  (Cb, pad_left + H*W + W + 1)  VMEM scratch (zero-padded flat image)
    """
    Cb = w1_ref.shape[0]
    HW = H * W

    x1 = x_ref[:Cb, :]         # pass-through half
    x2 = x_ref[Cb:, :]         # branch2 input half

    # ---- stage 1: 1x1 conv (+ folded BN scale) + bias + ReLU (MXU matmul) ----
    y = jnp.dot(w1_ref[...], x2, preferred_element_type=jnp.float32)
    y = jnp.maximum(y + b1_ref[...], 0.0)

    # ---- stage 2: depthwise 3x3 + BN bias, lane-dense on the flattened layout ----
    # Copy y into a zero-padded flat scratch: one zero row above/below becomes a flat
    # pad of >= W+1 lanes on each side (left pad rounded up to 128 for aligned stores).
    yp_ref[...] = jnp.zeros_like(yp_ref)
    yp_ref[:, pad_left:pad_left + HW] = y

    col = jax.lax.broadcasted_iota(jnp.int32, (Cb, HW), 1) % W
    not_left = col > 0           # valid when reading the dw = -1 neighbour
    not_right = col < (W - 1)    # valid when reading the dw = +1 neighbour

    acc = jnp.zeros((Cb, HW), jnp.float32)
    tap = 0
    for dh in (-1, 0, 1):          # static unroll: 9 shifted MACs
        for dw in (-1, 0, 1):
            start = pad_left + dh * W + dw
            v = yp_ref[:, start:start + HW]          # shifted view of padded y
            if dw == -1:
                v = jnp.where(not_left, v, 0.0)
            elif dw == 1:
                v = jnp.where(not_right, v, 0.0)
            acc = acc + v * dwk_ref[:, tap:tap + 1]  # (Cb,1) lane-broadcast
            tap += 1
    z = acc + b2_ref[...]

    # ---- stage 3: 1x1 conv (+ folded BN scale) + bias + ReLU ----
    u = jnp.dot(w3_ref[...], z, preferred_element_type=jnp.float32)
    u = jnp.maximum(u + b3_ref[...], 0.0)

    # ---- SE: global average pool -> fc -> ReLU -> fc -> sigmoid -> gate ----
    pooled = jnp.sum(u, axis=1, keepdims=True) * (1.0 / HW)                 # (Cb, 1)
    hid = jnp.maximum(jnp.dot(se1_ref[...], pooled,
                              preferred_element_type=jnp.float32), 0.0)     # (Cr, 1)
    logits = jnp.dot(se2_ref[...], hid, preferred_element_type=jnp.float32)  # (Cb, 1)
    gate = 1.0 / (1.0 + jnp.exp(-logits))
    ug = u * gate

    # ---- concat + channel_shuffle(groups=2) fused into the output ----
    # out[2c] = x1[c], out[2c+1] = branch2[c]; done as two constant scatter matmuls so
    # the store is a dense lane-wide (C, H*W) write (no sublane scatter, no XLA shuffle).
    o_ref[...] = (jnp.dot(she_ref[...], x1, preferred_element_type=jnp.float32) +
                  jnp.dot(sho_ref[...], ug, preferred_element_type=jnp.float32))


# ----------------------------------- wrapper ----------------------------------- #

_PAR = pltpu.CompilerParams(dimension_semantics=("parallel",))


def inverted_residual_stride1(x, kp):
    """Forward of InvertedResidual(input_c=C, output_c=C, stride=1). x: (B, C, H, W)."""
    B, C, H, W = x.shape
    Cb = C // 2
    Cr = kp["sew1"].shape[0]
    HW = H * W
    pad_left = ((W + 1 + 127) // 128) * 128          # aligned left pad (>= W+1)
    pad_total = pad_left + HW + W + 1

    x_flat = x.reshape(B, C, HW)

    kernel = functools.partial(_fused_block_kernel, H=H, W=W, pad_left=pad_left)
    out = pl.pallas_call(
        kernel,
        out_shape=jax.ShapeDtypeStruct((B, C, HW), jnp.float32),
        grid=(B,),
        in_specs=[
            pl.BlockSpec((None, C, HW), lambda i: (i, 0, 0)),   # x
            pl.BlockSpec((Cb, Cb), lambda i: (0, 0)),           # w1 (BN1-folded)
            pl.BlockSpec((Cb, 1), lambda i: (0, 0)),            # b1
            pl.BlockSpec((Cb, 9), lambda i: (0, 0)),            # dw taps (BN2-folded)
            pl.BlockSpec((Cb, 1), lambda i: (0, 0)),            # b2
            pl.BlockSpec((Cb, Cb), lambda i: (0, 0)),           # w3 (BN3-folded)
            pl.BlockSpec((Cb, 1), lambda i: (0, 0)),            # b3
            pl.BlockSpec((Cr, Cb), lambda i: (0, 0)),           # SE fc1
            pl.BlockSpec((Cb, Cr), lambda i: (0, 0)),           # SE fc2
            pl.BlockSpec((C, Cb), lambda i: (0, 0)),            # shuffle scatter (even)
            pl.BlockSpec((C, Cb), lambda i: (0, 0)),            # shuffle scatter (odd)
        ],
        out_specs=pl.BlockSpec((None, C, HW), lambda i: (i, 0, 0)),
        scratch_shapes=[pltpu.VMEM((Cb, pad_total), jnp.float32)],
        compiler_params=_PAR,
    )(x_flat, kp["w1"], kp["b1"], kp["dwk"], kp["b2"], kp["w3"], kp["b3"],
      kp["sew1"], kp["sew2"], kp["she"], kp["sho"])

    return out.reshape(B, C, H, W)                    # contiguous -> free reshape


# --------------------------- params / folding / reference ----------------------- #

def make_params(key, Cb, reduction=16):
    """Parameters in their 'PyTorch' form (unfolded BN scale/bias)."""
    ks = jax.random.split(key, 17)
    eps = 1e-5

    def bn_fold(kg, kb, km, kv, c):
        gamma = 1.0 + 0.1 * jax.random.normal(kg, (c,), jnp.float32)
        beta = 0.1 * jax.random.normal(kb, (c,), jnp.float32)
        mean = 0.1 * jax.random.normal(km, (c,), jnp.float32)
        var = 0.5 + jax.random.uniform(kv, (c,), jnp.float32)
        scale = gamma / jnp.sqrt(var + eps)
        bias = beta - mean * scale
        return scale, bias

    s1, b1 = bn_fold(ks[0], ks[1], ks[2], ks[3], Cb)
    s2, b2 = bn_fold(ks[4], ks[5], ks[6], ks[7], Cb)
    s3, b3 = bn_fold(ks[8], ks[9], ks[10], ks[11], Cb)
    Cr = Cb // reduction
    return {
        "w1": 0.1 * jax.random.normal(ks[12], (Cb, Cb), jnp.float32),
        "dw": 0.1 * jax.random.normal(ks[13], (Cb, 3, 3), jnp.float32),
        "w3": 0.1 * jax.random.normal(ks[14], (Cb, Cb), jnp.float32),
        "sew1": 0.1 * jax.random.normal(ks[15], (Cr, Cb), jnp.float32),
        "sew2": 0.1 * jax.random.normal(ks[16], (Cb, Cr), jnp.float32),
        "s1": s1.reshape(Cb, 1), "b1": b1.reshape(Cb, 1),
        "s2": s2.reshape(Cb, 1, 1), "b2": b2.reshape(Cb, 1, 1),
        "s3": s3.reshape(Cb, 1), "b3": b3.reshape(Cb, 1),
    }


def fold_params(p):
    """Fold BN scales into conv weights and build the shuffle scatter matrices."""
    Cb = p["w1"].shape[0]
    C = 2 * Cb
    eye = jnp.eye(Cb, dtype=jnp.float32)
    she = jnp.zeros((C, Cb), jnp.float32).at[0::2, :].set(eye)   # even <- x1
    sho = jnp.zeros((C, Cb), jnp.float32).at[1::2, :].set(eye)   # odd  <- branch2
    return {
        "w1": p["s1"] * p["w1"],
        "b1": p["b1"],
        "dwk": (p["s2"] * p["dw"]).reshape(Cb, 9),
        "b2": p["b2"].reshape(Cb, 1),
        "w3": p["s3"] * p["w3"],
        "b3": p["b3"],
        "sew1": p["sew1"],
        "sew2": p["sew2"],
        "she": she,
        "sho": sho,
    }


def reference_numpy(x, p):
    x = np.asarray(x, np.float64)
    pn = {k: np.asarray(v, np.float64) for k, v in p.items()}
    B, C, H, W = x.shape
    Cb = C // 2
    x1, x2 = x[:, :Cb], x[:, Cb:]

    y = np.einsum("oc,bchw->bohw", pn["w1"], x2)
    y = np.maximum(y * pn["s1"].reshape(1, Cb, 1, 1) + pn["b1"].reshape(1, Cb, 1, 1), 0.0)
    yp = np.pad(y, ((0, 0), (0, 0), (1, 1), (1, 1)))
    acc = np.zeros_like(y)
    for kh in range(3):
        for kw in range(3):
            acc += yp[:, :, kh:kh + H, kw:kw + W] * pn["dw"][None, :, kh, kw, None, None]
    z = acc * pn["s2"].reshape(1, Cb, 1, 1) + pn["b2"].reshape(1, Cb, 1, 1)
    u = np.einsum("oc,bchw->bohw", pn["w3"], z)
    u = np.maximum(u * pn["s3"].reshape(1, Cb, 1, 1) + pn["b3"].reshape(1, Cb, 1, 1), 0.0)
    pooled = u.mean(axis=(2, 3))                         # (B, Cb)
    h = np.maximum(pooled @ pn["sew1"].T, 0.0)
    g = 1.0 / (1.0 + np.exp(-(h @ pn["sew2"].T)))
    b2o = u * g[:, :, None, None]
    out = np.concatenate([x1, b2o], axis=1)
    out = out.reshape(B, 2, Cb, H, W).transpose(0, 2, 1, 3, 4).reshape(B, C, H, W)
    return out


# ------------------------------------- main ------------------------------------- #

if __name__ == "__main__":
    B, C, H, W = 2, 64, 16, 16          # input_c = output_c = 64, stride = 1
    key = jax.random.PRNGKey(0)
    kx, kparam = jax.random.split(key)
    x = jax.random.normal(kx, (B, C, H, W), jnp.float32)
    params = make_params(kparam, C // 2, reduction=16)
    kernel_params = fold_params(params)

    fwd = jax.jit(inverted_residual_stride1)
    out = jax.block_until_ready(fwd(x, kernel_params))

    ref = reference_numpy(x, params)
    np.testing.assert_allclose(np.asarray(out), ref, rtol=1e-4, atol=1e-5)
    assert out.shape == (B, C, H, W)

    print("KERNEL_OK")
</pallas_src>

<mosaic_0001>
module attributes {stable_mosaic.version = 11 : i64} {
  func.func @_fused_block_kernel(%arg0: i32, %arg1: memref<1x64x256xf32, #tpu.memory_space<vmem>>, %arg2: memref<32x32xf32, #tpu.memory_space<vmem>>, %arg3: memref<32x1xf32, #tpu.memory_space<vmem>>, %arg4: memref<32x9xf32, #tpu.memory_space<vmem>>, %arg5: memref<32x1xf32, #tpu.memory_space<vmem>>, %arg6: memref<32x32xf32, #tpu.memory_space<vmem>>, %arg7: memref<32x1xf32, #tpu.memory_space<vmem>>, %arg8: memref<2x32xf32, #tpu.memory_space<vmem>>, %arg9: memref<32x2xf32, #tpu.memory_space<vmem>>, %arg10: memref<64x32xf32, #tpu.memory_space<vmem>>, %arg11: memref<64x32xf32, #tpu.memory_space<vmem>>, %arg12: memref<1x64x256xf32, #tpu.memory_space<vmem>>, %arg13: memref<32x401xf32, #tpu.memory_space<vmem>>) attributes {dimension_semantics = [#tpu.dimension_semantics<parallel>], iteration_bounds = array<i64: 2>, scalar_prefetch = 0 : i64, scratch_operands = 1 : i64, tpu.core_type = #tpu.core_type<tc>, window_params = [{transform_indices = @transform_0, window_bounds = array<i64: 1, 64, 256>}, {pipeline_mode = #tpu.pipeline_mode<synchronous>, transform_indices = @transform_1, window_bounds = array<i64: 32, 32>}, {pipeline_mode = #tpu.pipeline_mode<synchronous>, transform_indices = @transform_2, window_bounds = array<i64: 32, 1>}, {pipeline_mode = #tpu.pipeline_mode<synchronous>, transform_indices = @transform_3, window_bounds = array<i64: 32, 9>}, {pipeline_mode = #tpu.pipeline_mode<synchronous>, transform_indices = @transform_4, window_bounds = array<i64: 32, 1>}, {pipeline_mode = #tpu.pipeline_mode<synchronous>, transform_indices = @transform_5, window_bounds = array<i64: 32, 32>}, {pipeline_mode = #tpu.pipeline_mode<synchronous>, transform_indices = @transform_6, window_bounds = array<i64: 32, 1>}, {pipeline_mode = #tpu.pipeline_mode<synchronous>, transform_indices = @transform_7, window_bounds = array<i64: 2, 32>}, {pipeline_mode = #tpu.pipeline_mode<synchronous>, transform_indices = @transform_8, window_bounds = array<i64: 32, 2>}, {pipeline_mode = #tpu.pipeline_mode<synchronous>, transform_indices = @transform_9, window_bounds = array<i64: 64, 32>}, {pipeline_mode = #tpu.pipeline_mode<synchronous>, transform_indices = @transform_10, window_bounds = array<i64: 64, 32>}, {transform_indices = @transform_11, window_bounds = array<i64: 1, 64, 256>}]} {
    %c0 = arith.constant 0 : index
    %c0_0 = arith.constant 0 : index
    %c0_1 = arith.constant 0 : index
    %0 = vector.load %arg1[%c0, %c0_0, %c0_1] : memref<1x64x256xf32, #tpu.memory_space<vmem>>, vector<1x32x256xf32>
    %1 = vector.shape_cast %0 : vector<1x32x256xf32> to vector<32x256xf32>
    %c0_2 = arith.constant 0 : index
    %c32 = arith.constant 32 : index
    %c0_3 = arith.constant 0 : index
    %2 = vector.load %arg1[%c0_2, %c32, %c0_3] : memref<1x64x256xf32, #tpu.memory_space<vmem>>, vector<1x32x256xf32>
    %3 = vector.shape_cast %2 : vector<1x32x256xf32> to vector<32x256xf32>
    %c0_4 = arith.constant 0 : index
    %c0_5 = arith.constant 0 : index
    %4 = vector.load %arg2[%c0_4, %c0_5] : memref<32x32xf32, #tpu.memory_space<vmem>>, vector<32x32xf32>
    %cst = arith.constant dense<0.000000e+00> : vector<32x256xf32>
    %5 = tpu.matmul %4, %3, %cst {dimension_numbers = #tpu.dot_dimension_numbers<[1], [0], [0], [1], [0, 0, 1, 1], [], []>} : vector<32x32xf32>, vector<32x256xf32>, vector<32x256xf32> -> vector<32x256xf32>
    %c0_6 = arith.constant 0 : index
    %c0_7 = arith.constant 0 : index
    %6 = vector.load %arg3[%c0_6, %c0_7] : memref<32x1xf32, #tpu.memory_space<vmem>>, vector<32x1xf32>
    %7 = vector.broadcast %6 : vector<32x1xf32> to vector<32x256xf32>
    %8 = arith.addf %5, %7 : vector<32x256xf32>
    %cst_8 = arith.constant 0.000000e+00 : f32
    %9 = vector.broadcast %cst_8 : f32 to vector<32x256xf32>
    %10 = arith.maximumf %8, %9 : vector<32x256xf32>
    %cst_9 = arith.constant 0.000000e+00 : f32
    %11 = vector.broadcast %cst_9 : f32 to vector<32x401xf32>
    %c0_10 = arith.constant 0 : index
    %c0_11 = arith.constant 0 : index
    %12 = vector.load %arg13[%c0_10, %c0_11] : memref<32x401xf32, #tpu.memory_space<vmem>>, vector<32x401xf32>
    tpu.vector_store %arg13[%c0_10, %c0_11], %11 {strides = array<i32>} : memref<32x401xf32, #tpu.memory_space<vmem>>, vector<32x401xf32>,
    %c0_12 = arith.constant 0 : index
    %c128 = arith.constant 128 : index
    %13 = vector.load %arg13[%c0_12, %c128] : memref<32x401xf32, #tpu.memory_space<vmem>>, vector<32x256xf32>
    tpu.vector_store %arg13[%c0_12, %c128], %10 {strides = array<i32>} : memref<32x401xf32, #tpu.memory_space<vmem>>, vector<32x256xf32>,
    %14 = tpu.iota {dimensions = array<i32: 1>} : vector<32x256xi32>
    %c16_i32 = arith.constant 16 : i32
    %c0_i32 = arith.constant 0 : i32
    %15 = arith.cmpi eq, %c16_i32, %c0_i32 : i32
    %c1_i32 = arith.constant 1 : i32
    %16 = arith.select %15, %c1_i32, %c16_i32 : i32
    %17 = vector.broadcast %16 : i32 to vector<32x256xi32>
    %18 = arith.remsi %14, %17 : vector<32x256xi32>
    %c0_i32_13 = arith.constant 0 : i32
    %19 = vector.broadcast %c0_i32_13 : i32 to vector<32x256xi32>
    %20 = arith.cmpi ne, %18, %19 : vector<32x256xi32>
    %c0_i32_14 = arith.constant 0 : i32
    %21 = vector.broadcast %c0_i32_14 : i32 to vector<32x256xi32>
    %22 = arith.cmpi slt, %18, %21 : vector<32x256xi32>
    %c0_i32_15 = arith.constant 0 : i32
    %23 = arith.cmpi slt, %16, %c0_i32_15 : i32
    %24 = vector.broadcast %23 : i1 to vector<32x256xi1>
    %25 = vector.broadcast %24 : vector<32x256xi1> to vector<32x256xi1>
    %26 = arith.xori %22, %25 : vector<32x256xi1>
    %27 = arith.andi %26, %20 : vector<32x256xi1>
    %28 = vector.broadcast %16 : i32 to vector<32x256xi32>
    %29 = arith.addi %18, %28 : vector<32x256xi32>
    %30 = arith.select %27, %29, %18 : vector<32x256xi1>, vector<32x256xi32>
    %c0_i32_16 = arith.constant 0 : i32
    %31 = vector.broadcast %c0_i32_16 : i32 to vector<32x256xi32>
    %32 = arith.cmpi sgt, %30, %31 : vector<32x256xi32>
    %c15_i32 = arith.constant 15 : i32
    %33 = vector.broadcast %c15_i32 : i32 to vector<32x256xi32>
    %34 = arith.cmpi slt, %30, %33 : vector<32x256xi32>
    %cst_17 = arith.constant 0.000000e+00 : f32
    %35 = vector.broadcast %cst_17 : f32 to vector<32x256xf32>
    %c0_18 = arith.constant 0 : index
    %c111 = arith.constant 111 : index
    %36 = vector.load %arg13[%c0_18, %c111] : memref<32x401xf32, #tpu.memory_space<vmem>>, vector<32x256xf32>
    %cst_19 = arith.constant 0.000000e+00 : f32
    %37 = vector.broadcast %cst_19 : f32 to vector<32x256xf32>
    %38 = arith.select %32, %36, %37 : vector<32x256xi1>, vector<32x256xf32>
    %c0_20 = arith.constant 0 : index
    %c0_21 = arith.constant 0 : index
    %39 = vector.load %arg4[%c0_20, %c0_21] : memref<32x9xf32, #tpu.memory_space<vmem>>, vector<32x1xf32>
    %40 = vector.broadcast %39 : vector<32x1xf32> to vector<32x256xf32>
    %41 = arith.mulf %38, %40 : vector<32x256xf32>
    %42 = arith.addf %35, %41 : vector<32x256xf32>
    %c0_22 = arith.constant 0 : index
    %c112 = arith.constant 112 : index
    %43 = vector.load %arg13[%c0_22, %c112] : memref<32x401xf32, #tpu.memory_space<vmem>>, vector<32x256xf32>
    %c0_23 = arith.constant 0 : index
    %c1 = arith.constant 1 : index
    %44 = vector.load %arg4[%c0_23, %c1] : memref<32x9xf32, #tpu.memory_space<vmem>>, vector<32x1xf32>
    %45 = vector.broadcast %44 : vector<32x1xf32> to vector<32x256xf32>
    %46 = arith.mulf %43, %45 : vector<32x256xf32>
    %47 = arith.addf %42, %46 : vector<32x256xf32>
    %c0_24 = arith.constant 0 : index
    %c113 = arith.constant 113 : index
    %48 = vector.load %arg13[%c0_24, %c113] : memref<32x401xf32, #tpu.memory_space<vmem>>, vector<32x256xf32>
    %cst_25 = arith.constant 0.000000e+00 : f32
    %49 = vector.broadcast %cst_25 : f32 to vector<32x256xf32>
    %50 = arith.select %34, %48, %49 : vector<32x256xi1>, vector<32x256xf32>
    %c0_26 = arith.constant 0 : index
    %c2 = arith.constant 2 : index
    %51 = vector.load %arg4[%c0_26, %c2] : memref<32x9xf32, #tpu.memory_space<vmem>>, vector<32x1xf32>
    %52 = vector.broadcast %51 : vector<32x1xf32> to vector<32x256xf32>
    %53 = arith.mulf %50, %52 : vector<32x256xf32>
    %54 = arith.addf %47, %53 : vector<32x256xf32>
    %c0_27 = arith.constant 0 : index
    %c127 = arith.constant 127 : index
    %55 = vector.load %arg13[%c0_27, %c127] : memref<32x401xf32, #tpu.memory_space<vmem>>, vector<32x256xf32>
    %cst_28 = arith.constant 0.000000e+00 : f32
    %56 = vector.broadcast %cst_28 : f32 to vector<32x256xf32>
    %57 = arith.select %32, %55, %56 : vector<32x256xi1>, vector<32x256xf32>
    %c0_29 = arith.constant 0 : index
    %c3 = arith.constant 3 : index
    %58 = vector.load %arg4[%c0_29, %c3] : memref<32x9xf32, #tpu.memory_space<vmem>>, vector<32x1xf32>
    %59 = vector.broadcast %58 : vector<32x1xf32> to vector<32x256xf32>
    %60 = arith.mulf %57, %59 : vector<32x256xf32>
    %61 = arith.addf %54, %60 : vector<32x256xf32>
    %c0_30 = arith.constant 0 : index
    %c128_31 = arith.constant 128 : index
    %62 = vector.load %arg13[%c0_30, %c128_31] : memref<32x401xf32, #tpu.memory_space<vmem>>, vector<32x256xf32>
    %c0_32 = arith.constant 0 : index
    %c4 = arith.constant 4 : index
    %63 = vector.load %arg4[%c0_32, %c4] : memref<32x9xf32, #tpu.memory_space<vmem>>, vector<32x1xf32>
    %64 = vector.broadcast %63 : vector<32x1xf32> to vector<32x256xf32>
    %65 = arith.mulf %62, %64 : vector<32x256xf32>
    %66 = arith.addf %61, %65 : vector<32x256xf32>
    %c0_33 = arith.constant 0 : index
    %c129 = arith.constant 129 : index
    %67 = vector.load %arg13[%c0_33, %c129] : memref<32x401xf32, #tpu.memory_space<vmem>>, vector<32x256xf32>
    %cst_34 = arith.constant 0.000000e+00 : f32
    %68 = vector.broadcast %cst_34 : f32 to vector<32x256xf32>
    %69 = arith.select %34, %67, %68 : vector<32x256xi1>, vector<32x256xf32>
    %c0_35 = arith.constant 0 : index
    %c5 = arith.constant 5 : index
    %70 = vector.load %arg4[%c0_35, %c5] : memref<32x9xf32, #tpu.memory_space<vmem>>, vector<32x1xf32>
    %71 = vector.broadcast %70 : vector<32x1xf32> to vector<32x256xf32>
    %72 = arith.mulf %69, %71 : vector<32x256xf32>
    %73 = arith.addf %66, %72 : vector<32x256xf32>
    %c0_36 = arith.constant 0 : index
    %c143 = arith.constant 143 : index
    %74 = vector.load %arg13[%c0_36, %c143] : memref<32x401xf32, #tpu.memory_space<vmem>>, vector<32x256xf32>
    %cst_37 = arith.constant 0.000000e+00 : f32
    %75 = vector.broadcast %cst_37 : f32 to vector<32x256xf32>
    %76 = arith.select %32, %74, %75 : vector<32x256xi1>, vector<32x256xf32>
    %c0_38 = arith.constant 0 : index
    %c6 = arith.constant 6 : index
    %77 = vector.load %arg4[%c0_38, %c6] : memref<32x9xf32, #tpu.memory_space<vmem>>, vector<32x1xf32>
    %78 = vector.broadcast %77 : vector<32x1xf32> to vector<32x256xf32>
    %79 = arith.mulf %76, %78 : vector<32x256xf32>
    %80 = arith.addf %73, %79 : vector<32x256xf32>
    %c0_39 = arith.constant 0 : index
    %c144 = arith.constant 144 : index
    %81 = vector.load %arg13[%c0_39, %c144] : memref<32x401xf32, #tpu.memory_space<vmem>>, vector<32x256xf32>
    %c0_40 = arith.constant 0 : index
    %c7 = arith.constant 7 : index
    %82 = vector.load %arg4[%c0_40, %c7] : memref<32x9xf32, #tpu.memory_space<vmem>>, vector<32x1xf32>
    %83 = vector.broadcast %82 : vector<32x1xf32> to vector<32x256xf32>
    %84 = arith.mulf %81, %83 : vector<32x256xf32>
    %85 = arith.addf %80, %84 : vector<32x256xf32>
    %c0_41 = arith.constant 0 : index
    %c145 = arith.constant 145 : index
    %86 = vector.load %arg13[%c0_41, %c145] : memref<32x401xf32, #tpu.memory_space<vmem>>, vector<32x256xf32>
    %cst_42 = arith.constant 0.000000e+00 : f32
    %87 = vector.broadcast %cst_42 : f32 to vector<32x256xf32>
    %88 = arith.select %34, %86, %87 : vector<32x256xi1>, vector<32x256xf32>
    %c0_43 = arith.constant 0 : index
    %c8 = arith.constant 8 : index
    %89 = vector.load %arg4[%c0_43, %c8] : memref<32x9xf32, #tpu.memory_space<vmem>>, vector<32x1xf32>
    %90 = vector.broadcast %89 : vector<32x1xf32> to vector<32x256xf32>
    %91 = arith.mulf %88, %90 : vector<32x256xf32>
    %92 = arith.addf %85, %91 : vector<32x256xf32>
    %c0_44 = arith.constant 0 : index
    %c0_45 = arith.constant 0 : index
    %93 = vector.load %arg5[%c0_44, %c0_45] : memref<32x1xf32, #tpu.memory_space<vmem>>, vector<32x1xf32>
    %94 = vector.broadcast %93 : vector<32x1xf32> to vector<32x256xf32>
    %95 = arith.addf %92, %94 : vector<32x256xf32>
    %c0_46 = arith.constant 0 : index
    %c0_47 = arith.constant 0 : index
    %96 = vector.load %arg6[%c0_46, %c0_47] : memref<32x32xf32, #tpu.memory_space<vmem>>, vector<32x32xf32>
    %cst_48 = arith.constant dense<0.000000e+00> : vector<32x256xf32>
    %97 = tpu.matmul %96, %95, %cst_48 {dimension_numbers = #tpu.dot_dimension_numbers<[1], [0], [0], [1], [0, 0, 1, 1], [], []>} : vector<32x32xf32>, vector<32x256xf32>, vector<32x256xf32> -> vector<32x256xf32>
    %c0_49 = arith.constant 0 : index
    %c0_50 = arith.constant 0 : index
    %98 = vector.load %arg7[%c0_49, %c0_50] : memref<32x1xf32, #tpu.memory_space<vmem>>, vector<32x1xf32>
    %99 = vector.broadcast %98 : vector<32x1xf32> to vector<32x256xf32>
    %100 = arith.addf %97, %99 : vector<32x256xf32>
    %cst_51 = arith.constant 0.000000e+00 : f32
    %101 = vector.broadcast %cst_51 : f32 to vector<32x256xf32>
    %102 = arith.maximumf %100, %101 : vector<32x256xf32>
    %cst_52 = arith.constant dense<0.000000e+00> : vector<32xf32>
    %103 = vector.multi_reduction <add>, %102, %cst_52 [1] : vector<32x256xf32> to vector<32xf32>
    %104 = vector.shape_cast %103 : vector<32xf32> to vector<32x1xf32>
    %cst_53 = arith.constant 3.906250e-03 : f32
    %105 = vector.broadcast %cst_53 : f32 to vector<32x1xf32>
    %106 = arith.mulf %104, %105 : vector<32x1xf32>
    %c0_54 = arith.constant 0 : index
    %c0_55 = arith.constant 0 : index
    %107 = vector.load %arg8[%c0_54, %c0_55] : memref<2x32xf32, #tpu.memory_space<vmem>>, vector<2x32xf32>
    %cst_56 = arith.constant dense<0.000000e+00> : vector<2x1xf32>
    %108 = tpu.matmul %107, %106, %cst_56 {dimension_numbers = #tpu.dot_dimension_numbers<[1], [0], [0], [1], [0, 0, 1, 1], [], []>} : vector<2x32xf32>, vector<32x1xf32>, vector<2x1xf32> -> vector<2x1xf32>
    %cst_57 = arith.constant 0.000000e+00 : f32
    %109 = vector.broadcast %cst_57 : f32 to vector<2x1xf32>
    %110 = arith.maximumf %108, %109 : vector<2x1xf32>
    %c0_58 = arith.constant 0 : index
    %c0_59 = arith.constant 0 : index
    %111 = vector.load %arg9[%c0_58, %c0_59] : memref<32x2xf32, #tpu.memory_space<vmem>>, vector<32x2xf32>
    %cst_60 = arith.constant dense<0.000000e+00> : vector<32x1xf32>
    %112 = tpu.matmul %111, %110, %cst_60 {dimension_numbers = #tpu.dot_dimension_numbers<[1], [0], [0], [1], [0, 0, 1, 1], [], []>} : vector<32x2xf32>, vector<2x1xf32>, vector<32x1xf32> -> vector<32x1xf32>
    %cst_61 = arith.constant 0.000000e+00 : f32
    %113 = vector.broadcast %cst_61 : f32 to vector<32x1xf32>
    %114 = arith.subf %113, %112 : vector<32x1xf32>
    %115 = math.exp %114 : vector<32x1xf32>
    %cst_62 = arith.constant 1.000000e+00 : f32
    %116 = vector.broadcast %cst_62 : f32 to vector<32x1xf32>
    %117 = arith.addf %116, %115 : vector<32x1xf32>
    %cst_63 = arith.constant 1.000000e+00 : f32
    %118 = vector.broadcast %cst_63 : f32 to vector<32x1xf32>
    %119 = arith.divf %118, %117 : vector<32x1xf32>
    %120 = vector.broadcast %119 : vector<32x1xf32> to vector<32x256xf32>
    %121 = arith.mulf %102, %120 : vector<32x256xf32>
    %c0_64 = arith.constant 0 : index
    %c0_65 = arith.constant 0 : index
    %122 = vector.load %arg10[%c0_64, %c0_65] : memref<64x32xf32, #tpu.memory_space<vmem>>, vector<64x32xf32>
    %cst_66 = arith.constant dense<0.000000e+00> : vector<64x256xf32>
    %123 = tpu.matmul %122, %1, %cst_66 {dimension_numbers = #tpu.dot_dimension_numbers<[1], [0], [0], [1], [0, 0, 1, 1], [], []>} : vector<64x32xf32>, vector<32x256xf32>, vector<64x256xf32> -> vector<64x256xf32>
    %c0_67 = arith.constant 0 : index
    %c0_68 = arith.constant 0 : index
    %124 = vector.load %arg11[%c0_67, %c0_68] : memref<64x32xf32, #tpu.memory_space<vmem>>, vector<64x32xf32>
    %cst_69 = arith.constant dense<0.000000e+00> : vector<64x256xf32>
    %125 = tpu.matmul %124, %121, %cst_69 {dimension_numbers = #tpu.dot_dimension_numbers<[1], [0], [0], [1], [0, 0, 1, 1], [], []>} : vector<64x32xf32>, vector<32x256xf32>, vector<64x256xf32> -> vector<64x256xf32>
    %126 = arith.addf %123, %125 : vector<64x256xf32>
    %c0_70 = arith.constant 0 : index
    %c0_71 = arith.constant 0 : index
    %c0_72 = arith.constant 0 : index
    %127 = vector.load %arg12[%c0_70, %c0_71, %c0_72] : memref<1x64x256xf32, #tpu.memory_space<vmem>>, vector<1x64x256xf32>
    %128 = vector.shape_cast %127 : vector<1x64x256xf32> to vector<64x256xf32>
    %129 = vector.shape_cast %126 : vector<64x256xf32> to vector<1x64x256xf32>
    tpu.vector_store %arg12[%c0_70, %c0_71, %c0_72], %129 {strides = array<i32>} : memref<1x64x256xf32, #tpu.memory_space<vmem>>, vector<1x64x256xf32>,
    return
  }
  func.func @transform_0(%arg0: i32) -> (i32, i32, i32) {
    %c0_i32 = arith.constant 0 : i32
    %c0_i32_0 = arith.constant 0 : i32
    %c0_i32_1 = arith.constant 0 : i32
    return %arg0, %c0_i32, %c0_i32_0 : i32, i32, i32
  }
  func.func @transform_1(%arg0: i32) -> (i32, i32) {
    %c0_i32 = arith.constant 0 : i32
    %c0_i32_0 = arith.constant 0 : i32
    %c0_i32_1 = arith.constant 0 : i32
    return %c0_i32, %c0_i32_0 : i32, i32
  }
  func.func @transform_2(%arg0: i32) -> (i32, i32) {
    %c0_i32 = arith.constant 0 : i32
    %c0_i32_0 = arith.constant 0 : i32
    %c0_i32_1 = arith.constant 0 : i32
    return %c0_i32, %c0_i32_0 : i32, i32
  }
  func.func @transform_3(%arg0: i32) -> (i32, i32) {
    %c0_i32 = arith.constant 0 : i32
    %c0_i32_0 = arith.constant 0 : i32
    %c0_i32_1 = arith.constant 0 : i32
    return %c0_i32, %c0_i32_0 : i32, i32
  }
  func.func @transform_4(%arg0: i32) -> (i32, i32) {
    %c0_i32 = arith.constant 0 : i32
    %c0_i32_0 = arith.constant 0 : i32
    %c0_i32_1 = arith.constant 0 : i32
    return %c0_i32, %c0_i32_0 : i32, i32
  }
  func.func @transform_5(%arg0: i32) -> (i32, i32) {
    %c0_i32 = arith.constant 0 : i32
    %c0_i32_0 = arith.constant 0 : i32
    %c0_i32_1 = arith.constant 0 : i32
    return %c0_i32, %c0_i32_0 : i32, i32
  }
  func.func @transform_6(%arg0: i32) -> (i32, i32) {
    %c0_i32 = arith.constant 0 : i32
    %c0_i32_0 = arith.constant 0 : i32
    %c0_i32_1 = arith.constant 0 : i32
    return %c0_i32, %c0_i32_0 : i32, i32
  }
  func.func @transform_7(%arg0: i32) -> (i32, i32) {
    %c0_i32 = arith.constant 0 : i32
    %c0_i32_0 = arith.constant 0 : i32
    %c0_i32_1 = arith.constant 0 : i32
    return %c0_i32, %c0_i32_0 : i32, i32
  }
  func.func @transform_8(%arg0: i32) -> (i32, i32) {
    %c0_i32 = arith.constant 0 : i32
    %c0_i32_0 = arith.constant 0 : i32
    %c0_i32_1 = arith.constant 0 : i32
    return %c0_i32, %c0_i32_0 : i32, i32
  }
  func.func @transform_9(%arg0: i32) -> (i32, i32) {
    %c0_i32 = arith.constant 0 : i32
    %c0_i32_0 = arith.constant 0 : i32
    %c0_i32_1 = arith.constant 0 : i32
    return %c0_i32, %c0_i32_0 : i32, i32
  }
  func.func @transform_10(%arg0: i32) -> (i32, i32) {
    %c0_i32 = arith.constant 0 : i32
    %c0_i32_0 = arith.constant 0 : i32
    %c0_i32_1 = arith.constant 0 : i32
    return %c0_i32, %c0_i32_0 : i32, i32
  }
  func.func @transform_11(%arg0: i32) -> (i32, i32, i32) {
    %c0_i32 = arith.constant 0 : i32
    %c0_i32_0 = arith.constant 0 : i32
    %c0_i32_1 = arith.constant 0 : i32
    return %arg0, %c0_i32, %c0_i32_0 : i32, i32, i32
  }
}

</mosaic_0001>

<bundles_post_ra>
// kernel: inverted_residual_stride1.1
= control target key start
LH: loop header
LB: loop body
LE: loop exit
PB: predicated region body
PF: predicated region fallthrough
CT: control target
= control target key end

     0   :  { %s2442_s17 = smov 0   ;;  %s3525_s0 = inlined_call_operand.vmem [shape: f32[2,64,256], index: 0, kind: input, shape index: {}]   ;;  %s3526_s1 = inlined_call_operand.vmem [shape: f32[32,32], index: 1, kind: input, shape index: {}]   ;;  %s3527_s2 = inlined_call_operand.vmem [shape: f32[32,1], index: 2, kind: input, shape index: {}]   ;;  %s3528_s3 = inlined_call_operand.vmem [shape: f32[32,9], index: 3, kind: input, shape index: {}]   ;;  %s3529_s4 = inlined_call_operand.vmem [shape: f32[32,1], index: 4, kind: input, shape index: {}]   ;;  %s3530_s5 = inlined_call_operand.vmem [shape: f32[32,32], index: 5, kind: input, shape index: {}]   ;;  %s3531_s6 = inlined_call_operand.vmem [shape: f32[32,1], index: 6, kind: input, shape index: {}]   ;;  %s3532_s7 = inlined_call_operand.vmem [shape: f32[2,32], index: 7, kind: input, shape index: {}]   ;;  %s3533_s8 = inlined_call_operand.vmem [shape: f32[32,2], index: 8, kind: input, shape index: {}]   ;;  %s3534_s9 = inlined_call_operand.vmem [shape: f32[64,32], index: 9, kind: input, shape index: {}]   ;;  %s3535_s10 = inlined_call_operand.vmem [shape: f32[64,32], index: 10, kind: input, shape index: {}]   ;;  %s3536_s11 = inlined_call_operand.vmem [shape: f32[2,64,256], index: 11, kind: output, shape index: {}]  }
   0x1 LB: > { %s2127_s18 = sadd.s32 4294967295, %s2360_s17   ;;  %p2131_p0 = scmp.ge.s32.totalorder %s2360_s17, 1  ;;  %s2360_s17 = sphi %s2442_s17, %s21_s17  }
   0x2   : > { %p337_p1 = scmp.lt.s32.totalorder %s2360_s17, 3 }
   0x4   : > { %p338_p2 = pnand %p2131_p0, %p337_p1 }
   0x6   : > { %341 = sbr.rel (%p338_p2) target bundleno = 1758 (0x6de), region = 64 }
   0xd   : > { %v2453_v0 = vld [vmem:[%s3528_s3] sm:$0xff]  ;;  %v409_v1 = vld [vmem:[%s3527_s2 + $0x10] sm:$0xff]  ;;  %p377_p3 = scmp.lt.s32.totalorder %s2127_s18, 1  ;;  %v2362_v2 = vmov 1   ;;  %v2363_v3 = vmov 0   ;;  %v2364_v4 = vmov 0.0  }
   0xe   : > { %2282 = vset.pattern.permute.xlu0 %v2362_v2  ;;  %2281 = vset.pattern.permute.xlu1 %v2363_v3  ;;  %541 = vst [vmem:[#allocation2] sm:$0xff] %v2364_v4  ;;  %v410_v5 = vld [vmem:[%s3527_s2 + $0x18] sm:$0xff]  ;;  %vm544_vm0 = vcmask 138240   ;;  %v2499_v15 = vld [vmem:[%s3528_s3 + $0x8] sm:$0xff]  ;;  %v2507_v20 = vld [vmem:[%s3528_s3 + $0x10] sm:$0xff]  ;;  %v2365_v21 = vmov 7  }
   0xf   : > { %710 = vperm.xlu0 %2282, %v2453_v0   ;;  %423 = vperm.xlu1 %2281, %v409_v1   ;;  %s3614_s18 = smov (!%p377_p3, %s2127_s18), 1  ;;  %v2470_v6 = vld [vmem:[%s3528_s3 + $0x18] sm:$0xff]  ;;  %545 = vst.msk [vmem:[#allocation2 + $0x18] sm:$0xff] %vm544_vm0, %v2364_v4  ;;  %549 = vst.msk [vmem:[#allocation2 + $0x38] sm:$0xff] %vm544_vm0, %v2364_v4  ;;  %v403_v22 = vld [vmem:[%s3526_s1] sm:$0xff]  ;;  %vm431_vm1 = vcmask 261120  }
  0x10   : > { %508 = vmatprep.mubr.f32.mxu0 %v2364_v4  ;;  %1484 = vmatprep.mubr.f32.mxu1 %v2364_v4  ;;  %s2168_s27 = sshll.u32 %s3614_s18, 7  ;;  %553 = vst.msk [vmem:[#allocation2 + $0x58] sm:$0xff] %vm544_vm0, %v2364_v4  ;;  %557 = vst.msk [vmem:[#allocation2 + $0x78] sm:$0xff] %vm544_vm0, %v2364_v4  ;;  %v2366_v23 = vmov 2   ;;  %v404_v24 = vld [vmem:[%s3526_s1 + $0x8] sm:$0xff]  ;;  %v405_v25 = vld [vmem:[%s3526_s1 + $0x10] sm:$0xff] }
  0x11   : > { %s2479_s30 = scalar_lea.vmem %s3525_s0, %s2168_s27  ;;  %v406_v26 = vld [vmem:[%s3526_s1 + $0x18] sm:$0xff]  ;;  %v2367_v27 = vmov 3   ;;  %s2368_s26 = smov 15   ;;  %v2369_v28 = vmov 4   ;;  %v2371_v29 = vmov 5   ;;  %v2372_v30 = vmov 6  }
  0x12   : > { %v396_v7 = vld [vmem:[%s2479_s30 + $0x48] sm:$0xff]  ;;  %v398_v8 = vld [vmem:[%s2479_s30 + $0x58] sm:$0xff]  ;;  %v395_v9 = vld [vmem:[%s2479_s30 + $0x40] sm:$0xff]  ;;  %s2370_s28 = smov 17   ;;  %s2373_s29 = smov 1   ;;  %v2374_v31 = vmov 8  }
  0x13   : > { %428 = vperm.xlu1 %2281, %v410_v5   ;;  %722 = vperm.xlu0 %2282, %v2470_v6   ;;  %v2199_v10 = vpack.c.bf16 %v398_v8, %v396_v7  ;;  %v397_v11 = vld [vmem:[%s2479_s30 + $0x50] sm:$0xff]  ;;  %v400_v12 = vld [vmem:[%s2479_s30 + $0x68] sm:$0xff]  ;;  %v402_v13 = vld [vmem:[%s2479_s30 + $0x78] sm:$0xff]  ;;  %s2375_s16 = smov 127   ;;  %s2376_s19 = smov 113   ;;  %vm1040_vm2 = vcmask 1039360  }
  0x14   : > { %v2201_v14 = vpack.c.bf16 %v397_v11, %v395_v9  ;;  %v2203_v16 = vpack.c.bf16 %v402_v13, %v400_v12  ;;  %v399_v17 = vld [vmem:[%s2479_s30 + $0x60] sm:$0xff]  ;;  %v401_v18 = vld [vmem:[%s2479_s30 + $0x70] sm:$0xff]  ;;  %v408_v33 = vld [vmem:[%s3527_s2 + $0x8] sm:$0xff]  ;;  %s2377_s20 = smov 16   ;;  %s2378_s25 = smov 111   ;;  %vm822_vm3 = vcmask 121856  }
  0x15   : > { %2200 = vmatprep.subr.bf16.mxu0 %v2199_v10  ;;  %v2205_v19 = vpack.c.bf16 %v401_v18, %v399_v17  ;;  %v407_v32 = vld [vmem:[%s3527_s2] sm:$0xff]  ;;  %v1349_v41 = vld [vmem:[%s3529_s4 + $0x8] sm:$0xff]  ;;  %s2379_s12 = smov 112   ;;  %vm1121_vm4 = vcmask 924672   ;;  %vm903_vm5 = vcmask 7168   ;;  %vm773_vm10 = vcmask 130048  }
  0x16   : > { %2202 = vmatpush1.bf16.msra.mxu0 %v2201_v14  ;;  %v994_v34 = vld [vmem:[#allocation2 + $0x18] sm:$0xff]  ;;  %v1348_v55 = vld [vmem:[%s3529_s4] sm:$0xff]  ;;  %vm1242_vm11 = vcmask 916480   ;;  %vm1291_vm12 = vcmask 908288   ;;  %vm2381_vm13 = vmmov 0   ;;  %vm1612_vm14 = vcmask 15360  }
  0x17   : > { %2283 = vset.pattern.permute.xlu1 %v2362_v2  ;;  %2204 = vmatprep.subr.bf16.mxu0 %v2203_v16  ;;  %v2579_v35 = vld [vmem:[#allocation2 + $0x38] sm:$0xff]  ;;  %vm1625_vm15 = vcmask 1041408  }
  0x18   : > { %714 = vperm.xlu1 %2283, %v2499_v15   ;;  %2285 = vset.pattern.permute.xlu0 %v2365_v21  ;;  %v2589_v36 = vld [vmem:[#allocation2 + $0x58] sm:$0xff] }
  0x19   : > { %1183 = vperm.xlu0 %2285, %v2499_v15   ;;  %v2598_v40 = vld [vmem:[#allocation2 + $0x78] sm:$0xff] }
  0x1a   : > { %2206 = vmatpush1.bf16.msra.mxu0 %v2205_v19 }
  0x1c   : > { %718 = vperm.xlu1 %2283, %v2507_v20  }
  0x1d   : > { %2136 = vmatmul.mubr.msk.f32.vlgmr.msra.gmra.mrb[0].mxu0 %vm431_vm1, %v403_v22  ;;  %2288 = vset.pattern.permute.xlu0 %v2366_v23 }
  0x1e   : > { %514 = vmatprep.mubr.f32.mxu0 %v2364_v4  ;;  %852 = vperm.xlu0 %2288, %v2499_v15  }
  0x20   : > { %2284 = vset.pattern.permute.xlu1 %v2365_v21 }
  0x21   : > { %1179 = vperm.xlu1 %2284, %v2453_v0   ;;  %2137 = vmatmul.mubr.msk.f32.gmra.mrb[2].mxu0 %vm431_vm1, %v404_v24 }
  0x22   : > { %520 = vmatprep.mubr.f32.mxu0 %v2364_v4  ;;  %856 = vperm.xlu0 %2288, %v2507_v20  }
  0x25   : > { %1187 = vperm.xlu1 %2284, %v2507_v20   ;;  %2138 = vmatmul.mubr.msk.f32.gmra.mrb[4].mxu0 %vm431_vm1, %v405_v25 }
  0x26   : > { %526 = vmatprep.mubr.f32.mxu0 %v2364_v4  ;;  %2296 = vset.pattern.permute.xlu0 %v2367_v27 }
  0x27   : > { %929 = vperm.xlu0 %2296, %v2453_v0  }
  0x29   : > { %1191 = vperm.xlu1 %2284, %v2470_v6   ;;  %2139 = vmatmul.mubr.msk.f32.gmra.mrb[6].mxu0 %vm431_vm1, %v406_v26 }
  0x2b   : > { %2300 = vrot.lane.b32.xlu0 %v2364_v4, %s2368_s26 }
  0x2d   : > { %2286 = vset.pattern.permute.xlu1 %v2363_v3 }
  0x2e   : > { %680 = vperm.xlu1 %2286, %v2499_v15  }
  0x2f   : > { %941 = vperm.xlu0 %2296, %v2470_v6  }
  0x32   : > { %2287 = vset.pattern.permute.xlu1 %v2366_v23 }
  0x33   : > { %848 = vperm.xlu1 %2287, %v2453_v0   ;;  %2305 = vset.pattern.permute.xlu0 %v2369_v28 }
  0x34   : > { %965 = vperm.xlu0 %2305, %v2499_v15  }
  0x37   : > { %2289 = vset.pattern.permute.xlu1 %v2363_v3 }
  0x38   : > { %685 = vperm.xlu1 %2289, %v2507_v20   ;;  %2308 = vrot.lane.b32.xlu0 %v2364_v4, %s2370_s28 }
  0x3c   : > { %690 = vperm.xlu1 %2289, %v2470_v6   ;;  %969 = vperm.xlu0 %2305, %v2507_v20  }
  0x40   : > { %2290 = vset.pattern.permute.xlu1 %v2367_v27  ;;  %2320 = vrot.lane.b32.xlu0 %v2364_v4, %s2368_s26 }
  0x41   : > { %933 = vperm.xlu1 %2290, %v2499_v15   ;;  %2325 = vset.pattern.permute.xlu0 %v2371_v29 }
  0x44   : > { %1078 = vperm.xlu0 %2325, %v2470_v6  }
  0x45   : > { %2292 = vrot.lane.b32.xlu1 %v2364_v4, %s2370_s28 }
  0x46   : > { %2297 = vset.pattern.permute.xlu1 %v2366_v23 }
  0x48   : > { %2326 = vset.pattern.permute.xlu0 %v2372_v30 }
  0x49   : > { %860 = vperm.xlu1 %2297, %v2470_v6   ;;  %1151 = vperm.xlu0 %2326, %v2499_v15  }
  0x4d   : > { %2298 = vset.pattern.permute.xlu1 %v2369_v28  ;;  %2328 = vrot.lane.b32.xlu0 %v2364_v4, %s2373_s29 }
  0x4e   : > { %961 = vperm.xlu1 %2298, %v2453_v0  }
  0x51   : > { %1159 = vperm.xlu0 %2326, %v2470_v6  }
  0x52   : > { %2304 = vset.pattern.permute.xlu1 %v2367_v27 }
  0x53   : > { %937 = vperm.xlu1 %2304, %v2507_v20  }
  0x55   : > { %2334 = vset.pattern.permute.xlu0 %v2374_v31 }
  0x56   : > { %1325 = vperm.xlu0 %2334, %v2507_v20  }
  0x57   : > { %2306 = vset.pattern.permute.xlu1 %v2371_v29 }
  0x58   : > { %1066 = vperm.xlu1 %2306, %v2453_v0  }
  0x5a   : > { %2335 = vset.pattern.permute.xlu0 %v2363_v3 }
  0x5b   : > { %413 = vperm.xlu0 %2335, %v407_v32  }
  0x5c   : > { %1070 = vperm.xlu1 %2306, %v2499_v15  }
  0x5f   : > { %418 = vperm.xlu0 %2335, %v408_v33  }
  0x60   : > { %2313 = vrot.lane.b32.xlu1 %v2364_v4, %s2373_s29 }
  0x61   : > { %2317 = vset.pattern.permute.xlu1 %v2369_v28 }
  0x63   : > { %675 = vperm.xlu0 %2335, %v2453_v0  }
  0x64   : > { %973 = vperm.xlu1 %2317, %v2470_v6  }
  0x68   : > { %2318 = vset.pattern.permute.xlu1 %v2372_v30 }
  0x69   : > { %1147 = vperm.xlu1 %2318, %v2453_v0  }
  0x6d   : > { %2324 = vset.pattern.permute.xlu1 %v2371_v29 }
  0x6e   : > { %1074 = vperm.xlu1 %2324, %v2507_v20  }
  0x72   : > { %1020 = vrot.lane.b32.xlu1 %v994_v34, %s2375_s16 }
  0x73   : > { %2332 = vset.pattern.permute.xlu1 %v2372_v30 }
  0x76   : > { %1026 = vrot.lane.b32.xlu1 %v2579_v35, %s2375_s16 }
  0x7a   : > { %1155 = vperm.xlu1 %2332, %v2507_v20  }
  0x7e   : > { %2333 = vset.pattern.permute.xlu1 %v2374_v31 }
  0x7f   : > { %1317 = vperm.xlu1 %2333, %v2453_v0  }
  0x83   : > { %1321 = vperm.xlu1 %2333, %v2499_v15  }
  0x87   : > { %1101 = vrot.lane.b32.xlu1 %v994_v34, %s2376_s19 }
  0x8b   : > { %1107 = vrot.lane.b32.xlu1 %v2579_v35, %s2376_s19 }
  0x8e   : > { %v2591_v37 = vpop.permute.xlu0 %710  ;;  %v2593_v38 = vpop.permute.xlu1 %423 }
  0x8f   : > { %v725_v39 = vmul.f32 0.0, %v2591_v37  ;;  %1032 = vrot.lane.b32.xlu1 %v2589_v36, %s2375_s16 }
  0x91   : > { %749 = vrot.lane.b32.xlu0 %v725_v39, %s2377_s20 }
  0x92   : > { %v2604_v42 = vpop.permute.xlu1 %428  ;;  %v2608_v43 = vpop.permute.xlu0 %722 }
  0x93   : > { %1038 = vrot.lane.b32.xlu1 %v2598_v40, %s2375_s16  ;;  %v734_v49 = vmul.f32 0.0, %v2608_v43 }
  0x95   : > { %1359 = vperm.xlu0 %2335, %v1349_v41  }
  0x97   : > { %v2610_v44 = vpop.permute.xlu1 %714 }
  0x98   : > { %v728_v45 = vmul.f32 0.0, %v2610_v44  ;;  %v2613_v46 = vpop.permute.xlu0 %1183 }
  0x9a   : > { %755 = vrot.lane.b32.xlu1 %v728_v45, %s2377_s20 }
  0x9b   : > { %v2616_v47 = vpop.permute.xlu1 %718 }
  0x9c   : > { %v731_v48 = vmul.f32 0.0, %v2616_v47 }
  0x9d   : > { %v2621_v50 = vpop.permute.xlu0 %852 }
  0x9e   : > { %761 = vrot.lane.b32.xlu1 %v731_v48, %s2377_s20 }
  0xa0   : > { %v2623_v51 = vpop.permute.xlu1 %1179 }
  0xa1   : > { %v2628_v53 = vpop.permute.xlu0 %856  ;;  %v1196_v63 = vmul.f32 %v2623_v51, %v994_v34 }
  0xa2   : > { %767 = vrot.lane.b32.xlu1 %v734_v49, %s2377_s20 }
  0xa4   : > { %v2626_v52 = vpop.permute.xlu1 %1187 }
  0xa6   : > { %1329 = vperm.xlu1 %2333, %v2470_v6   ;;  %v2637_v56 = vpop.permute.xlu0 %929 }
  0xa8   : > { %v2631_v54 = vpop.permute.xlu1 %1191 }
  0xaa   : > { %2336 = vset.pattern.permute.xlu1 %v2363_v3  ;;  %v2643_v58 = vpop.permute.xlu0 %2300 }
  0xab   : > { %1354 = vperm.xlu1 %2336, %v1348_v55  }
  0xad   : > { %v2639_v57 = vpop.permute.xlu1 %680 }
  0xae   : > { %v2649_v60 = vpop.permute.xlu0 %941 }
  0xaf   : > { %1113 = vrot.lane.b32.xlu1 %v2589_v36, %s2376_s19  ;;  %3555 = vst [vmem:[#allocation3_spill] sm:$0xff] %v2649_v60 }
  0xb2   : > { %v2645_v59 = vpop.permute.xlu1 %848 }
  0xb3   : > { %1119 = vrot.lane.b32.xlu1 %v2598_v40, %s2376_s19  ;;  %v2659_v0 = vpop.permute.xlu0 %965 }
  0xb7   : > { %v2651_v61 = vpop.permute.xlu1 %685  ;;  %1271 = vrot.lane.b32.xlu1 %v994_v34, %s2378_s25  ;;  %v2664_v2 = vpop.permute.xlu0 %2308 }
  0xbb   : > { %v2654_v62 = vpop.permute.xlu1 %690  ;;  %1277 = vrot.lane.b32.xlu1 %v2579_v35, %s2378_s25  ;;  %v2670_v5 = vpop.permute.xlu0 %969 }
  0xbc   : > { %3556 = vst [vmem:[#allocation4_spill] sm:$0xff] %v2654_v62  ;;  %3558 = vst [vmem:[#allocation6_spill] sm:$0xff] %v2670_v5  ;;  %v2302_v62 = vunpack.i.l.bf16 %v2643_v58 }
  0xbf   : > { %1222 = vrot.lane.b32.xlu1 %v1196_v63, %s2379_s12  ;;  %v2674_v7 = vpop.permute.xlu0 %2320 }
  0xc0   : > { %v2662_v1 = vpop.permute.xlu1 %933 }
  0xc3   : > { %v2678_v9 = vpop.permute.xlu0 %1078 }
  0xc4   : > { %v2666_v3 = vpop.permute.xlu1 %2292  ;;  %3559 = vst [vmem:[#allocation7_spill] sm:$0xff] %v2678_v9 }
  0xc8   : > { %v2668_v4 = vpop.permute.xlu1 %860  ;;  %v2682_v11 = vpop.permute.xlu0 %1151 }
  0xc9   : > { %3557 = vst [vmem:[#allocation5_spill] sm:$0xff] %v2668_v4 }
  0xcc   : > { %v2686_v13 = vpop.permute.xlu0 %2328 }
  0xcd   : > { %v2672_v6 = vpop.permute.xlu1 %961 }
  0xd0   : > { %v2690_v15 = vpop.permute.xlu0 %1159 }
  0xd1   : > { %3560 = vst [vmem:[#allocation8_spill] sm:$0xff] %v2690_v15 }
  0xd2   : > { %v2676_v8 = vpop.permute.xlu1 %937 }
  0xd5   : > { %v2694_v17 = vpop.permute.xlu0 %1325 }
  0xd6   : > { %3562 = vst [vmem:[#allocation10_spill] sm:$0xff] %v2694_v17 }
  0xd7   : > { %v2680_v10 = vpop.permute.xlu1 %1066 }
  0xda   : > { %v414_v19 = vpop.permute.xlu0 %413 }
  0xdb   : > { %v2684_v12 = vpop.permute.xlu1 %1070 }
  0xde   : > { %v419_v26 = vpop.permute.xlu0 %418 }
  0xdf   : > { %v2688_v14 = vpop.permute.xlu1 %2313 }
  0xe3   : > { %v2692_v16 = vpop.permute.xlu1 %973 }
  0xe4   : > { %3561 = vst [vmem:[#allocation9_spill] sm:$0xff] %v2692_v16 }
  0xe8   : > { %v2696_v18 = vpop.permute.xlu1 %1147 }
  0xed   : > { %v2698_v24 = vpop.permute.xlu1 %1074 }
  0xee   : > { %3563 = vst [vmem:[#allocation11_spill] sm:$0xff] %v2698_v24 }
  0xf0   : > { %v510_v20 = vpop.f32.mrb[0].mxu0 }
  0xf1   : > { %v511_v21 = vadd.f32 %v510_v20, %v414_v19  ;;  %v512_v22 = vpop.f32.mrb[1].mxu0  ;;  %v2712_v39 = vpop.permute.xlu1 %1020 }
  0xf2   : > { %v513_v23 = vadd.f32 %v512_v22, %v414_v19 }
  0xf3   : > { %v2700_v25 = vmax.f32 %v511_v21, 0.0 }
  0xf4   : > { %v2702_v27 = vmax.f32 %v513_v23, 0.0  ;;  %v516_v28 = vpop.f32.mrb[2].mxu0 }
  0xf5   : > { %v517_v29 = vadd.f32 %v516_v28, %v419_v26  ;;  %v518_v30 = vpop.f32.mrb[3].mxu0  ;;  %881 = vrot.lane.b32.xlu0 %v2700_v25, %s2373_s29  ;;  %623 = vrot.lane.b32.xlu1 %v2700_v25, %s2370_s28  ;;  %v2730_v22 = vpop.permute.xlu1 %1026 }
  0xf6   : > { %v519_v31 = vadd.f32 %v518_v30, %v419_v26  ;;  %3564 = vst [vmem:[#allocation12_spill] sm:$0xff] %v2730_v22  ;;  %v1195_v30 = vmul.f32 %v2623_v51, %v2702_v27 }
  0xf7   : > { %v2708_v32 = vmax.f32 %v517_v29, 0.0  ;;  %v726_v29 = vmul.f32 %v2591_v37, %v2700_v25 }
  0xf8   : > { %v2710_v33 = vmax.f32 %v519_v31, 0.0  ;;  %v522_v34 = vpop.f32.mrb[4].mxu0 }
  0xf9   : > { %v523_v41 = vadd.f32 %v522_v34, %v2593_v38  ;;  %v524_v45 = vpop.f32.mrb[5].mxu0  ;;  %1097 = vrot.lane.b32.xlu0 %v2700_v25, %s2376_s19  ;;  %800 = vrot.lane.b32.xlu1 %v2700_v25, %s2368_s26  ;;  %v2740_v26 = vpop.permute.xlu1 %1155 }
  0xfa   : > { %v525_v48 = vadd.f32 %v524_v45, %v2593_v38  ;;  %3567 = vst [vmem:[#allocation15_spill] sm:$0xff] %v2740_v26  ;;  %v730_v34 = vmul.f32 %v2610_v44, %v2710_v33  ;;  %v1198_v15 = vmul.f32 %v2613_v46, %v2710_v33 }
  0xfb   : > { %v2720_v49 = vmax.f32 %v523_v41, 0.0 }
  0xfc   : > { %v2722_v55 = vmax.f32 %v525_v48, 0.0  ;;  %v528_v63 = vpop.f32.mrb[6].mxu0 }
  0xfd   : > { %v529_v19 = vadd.f32 %v528_v63, %v2604_v42  ;;  %v530_v20 = vpop.f32.mrb[7].mxu0  ;;  %625 = vrot.lane.b32.xlu0 %v2702_v27, %s2370_s28  ;;  %1016 = vrot.lane.b32.xlu1 %v2700_v25, %s2375_s16 }
  0xfe   : > { %v531_v21 = vadd.f32 %v530_v20, %v2604_v42  ;;  %v727_v42 = vmul.f32 %v2591_v37, %v2702_v27  ;;  %v2751_v28 = vpop.permute.xlu1 %1317  ;;  %v733_v20 = vmul.f32 %v2616_v47, %v2722_v55  ;;  %v1201_v22 = vmul.f32 %v2626_v52, %v2722_v55 }
  0xff   : > { %v2732_v23 = vmax.f32 %v529_v19, 0.0  ;;  %3568 = vst [vmem:[#allocation16_spill] sm:$0xff] %v2751_v28  ;;  %v729_v19 = vmul.f32 %v2610_v44, %v2708_v32 }
 0x100   : > { %v2734_v38 = vmax.f32 %v531_v21, 0.0 }
 0x101   : > { %3565 = vst [vmem:[#allocation13_spill] sm:$0xff] %v2732_v23  ;;  %1018 = vrot.lane.b32.xlu0 %v2702_v27, %s2375_s16  ;;  %802 = vrot.lane.b32.xlu1 %v2702_v27, %s2368_s26 }
 0x102   : > { %3566 = vst [vmem:[#allocation14_spill] sm:$0xff] %v2734_v38  ;;  %v2760_v31 = vpop.permute.xlu1 %1321 }
 0x103   : > { %3569 = vst [vmem:[#allocation17_spill] sm:$0xff] %v2760_v31  ;;  %v1194_v31 = vmul.f32 %v2623_v51, %v2700_v25 }
 0x105   : > { %1099 = vrot.lane.b32.xlu0 %v2702_v27, %s2376_s19  ;;  %883 = vrot.lane.b32.xlu1 %v2702_v27, %s2373_s29 }
 0x106   : > { %v2769_v37 = vpop.permute.xlu1 %1101 }
 0x109   : > { %1269 = vrot.lane.b32.xlu0 %v2702_v27, %s2378_s25  ;;  %753 = vrot.lane.b32.xlu1 %v727_v42, %s2377_s20 }
 0x10a   : > { %v2777_v41 = vpop.permute.xlu1 %1107 }
 0x10b   : > { %3570 = vst [vmem:[#allocation18_spill] sm:$0xff] %v2777_v41 }
 0x10d   : > { %629 = vrot.lane.b32.xlu1 %v2708_v32, %s2370_s28  ;;  %751 = vrot.lane.b32.xlu0 %v726_v29, %s2377_s20 }
 0x10e   : > { %v2786_v45 = vpop.permute.xlu1 %1032 }
 0x111   : > { %1103 = vrot.lane.b32.xlu1 %v2708_v32, %s2376_s19  ;;  %1220 = vrot.lane.b32.xlu0 %v1195_v30, %s2379_s12  ;;  %v732_v30 = vmul.f32 %v2616_v47, %v2720_v49 }
 0x112   : > { %v2792_v48 = vpop.permute.xlu1 %1038 }
 0x113   : > { %3571 = vst [vmem:[#allocation19_spill] sm:$0xff] %v2792_v48 }
 0x115   : > { %808 = vrot.lane.b32.xlu1 %v2710_v33, %s2368_s26  ;;  %806 = vrot.lane.b32.xlu0 %v2708_v32, %s2368_s26 }
 0x116   : > { %v2802_v63 = vpop.permute.xlu1 %755 }
 0x119   : > { %889 = vrot.lane.b32.xlu1 %v2710_v33, %s2373_s29  ;;  %887 = vrot.lane.b32.xlu0 %v2708_v32, %s2373_s29 }
 0x11a   : > { %v2811_v21 = vpop.permute.xlu1 %761 }
 0x11d   : > { %759 = vrot.lane.b32.xlu1 %v730_v34, %s2377_s20  ;;  %1022 = vrot.lane.b32.xlu0 %v2708_v32, %s2375_s16  ;;  %v1199_v34 = vmul.f32 %v2613_v46, %v2579_v35 }
 0x11e   : > { %v2820_v44 = vpop.permute.xlu1 %767 }
 0x11f   : > { %3572 = vst [vmem:[#allocation20_spill] sm:$0xff] %v2820_v44 }
 0x121   : > { %812 = vrot.lane.b32.xlu1 %v2720_v49, %s2368_s26  ;;  %631 = vrot.lane.b32.xlu0 %v2710_v33, %s2370_s28 }
 0x125   : > { %637 = vrot.lane.b32.xlu1 %v2722_v55, %s2370_s28  ;;  %1024 = vrot.lane.b32.xlu0 %v2710_v33, %s2375_s16  ;;  %v2826_v42 = vpop.permute.xlu1 %1329 }
 0x126   : > { %3573 = vst [vmem:[#allocation21_spill] sm:$0xff] %v2826_v42 }
 0x129   : > { %814 = vrot.lane.b32.xlu1 %v2722_v55, %s2368_s26  ;;  %1105 = vrot.lane.b32.xlu0 %v2710_v33, %s2376_s19 }
 0x12a   : > { %v2836_v29 = vpop.permute.xlu1 %1354 }
 0x12b   : > { %3574 = vst [vmem:[#allocation22_spill] sm:$0xff] %v2836_v29 }
 0x12d   : > { %895 = vrot.lane.b32.xlu1 %v2722_v55, %s2373_s29  ;;  %1275 = vrot.lane.b32.xlu0 %v2710_v33, %s2378_s25 }
 0x131   : > { %1111 = vrot.lane.b32.xlu1 %v2722_v55, %s2376_s19  ;;  %757 = vrot.lane.b32.xlu0 %v729_v19, %s2377_s20  ;;  %v2845_v19 = vpop.permute.xlu1 %1113 }
 0x135   : > { %765 = vrot.lane.b32.xlu1 %v733_v20, %s2377_s20  ;;  %635 = vrot.lane.b32.xlu0 %v2720_v49, %s2370_s28  ;;  %v736_v20 = vmul.f32 %v2608_v43, %v2734_v38  ;;  %v2855_v47 = vpop.permute.xlu1 %1119 }
 0x136   : > { %3575 = vst [vmem:[#allocation23_spill] sm:$0xff] %v2855_v47  ;;  %v735_v47 = vmul.f32 %v2608_v43, %v2732_v23  ;;  %v1202_v43 = vmul.f32 %v2626_v52, %v2589_v36 }
 0x139   : > { %1034 = vrot.lane.b32.xlu1 %v2732_v23, %s2375_s16  ;;  %893 = vrot.lane.b32.xlu0 %v2720_v49, %s2373_s29  ;;  %v2861_v35 = vpop.permute.xlu1 %1271 }
 0x13a   : > { %3576 = vst [vmem:[#allocation24_spill] sm:$0xff] %v2861_v35  ;;  %v2315_v35 = vunpack.i.l.bf16 %v2688_v14 }
 0x13d   : > { %1115 = vrot.lane.b32.xlu1 %v2732_v23, %s2376_s19  ;;  %1028 = vrot.lane.b32.xlu0 %v2720_v49, %s2375_s16  ;;  %v2875_v17 = vpop.permute.xlu1 %1277 }
 0x13e   : > { %3577 = vst [vmem:[#allocation25_spill] sm:$0xff] %v2875_v17 }
 0x141   : > { %643 = vrot.lane.b32.xlu1 %v2734_v38, %s2370_s28  ;;  %1109 = vrot.lane.b32.xlu0 %v2720_v49, %s2376_s19  ;;  %v2886_v48 = vpop.permute.xlu1 %1222 }
 0x145   : > { %820 = vrot.lane.b32.xlu1 %v2734_v38, %s2368_s26  ;;  %1030 = vrot.lane.b32.xlu0 %v2722_v55, %s2375_s16 }
 0x149   : > { %901 = vrot.lane.b32.xlu1 %v2734_v38, %s2373_s29  ;;  %763 = vrot.lane.b32.xlu0 %v732_v30, %s2377_s20  ;;  %v1197_v30 = vmul.f32 %v2613_v46, %v2708_v32 }
 0x14d   : > { %1228 = vrot.lane.b32.xlu1 %v1199_v34, %s2379_s12  ;;  %641 = vrot.lane.b32.xlu0 %v2732_v23, %s2370_s28  ;;  %v2865_v34 = vpop.permute.xlu0 %675 }
 0x151   : > { %771 = vrot.lane.b32.xlu1 %v736_v20, %s2377_s20  ;;  %818 = vrot.lane.b32.xlu0 %v2732_v23, %s2368_s26  ;;  %v1351_v20 = vld [vmem:[%s3529_s4 + $0x18] sm:$0xff]  ;;  %v2873_v42 = vpop.permute.xlu0 %749 }
 0x155   : > { %1273 = vrot.lane.b32.xlu1 %v2708_v32, %s2378_s25  ;;  %899 = vrot.lane.b32.xlu0 %v2732_v23, %s2373_s29  ;;  %s3504_s29 = scalar_lea.vmem %s3536_s11, %s2168_s27 }
 0x159   : > { %1224 = vrot.lane.b32.xlu1 %v1197_v30, %s2379_s12  ;;  %1036 = vrot.lane.b32.xlu0 %v2734_v38, %s2375_s16  ;;  %v2884_v30 = vpop.permute.xlu0 %1359 }
 0x15a   : > { %3578 = vst [vmem:[#allocation26_spill] sm:$0xff] %v2884_v30  ;;  %v566_v30 = vlaneseq }
 0x15d   : > { %1369 = vperm.xlu1 %2336, %v1351_v20   ;;  %1117 = vrot.lane.b32.xlu0 %v2734_v38, %s2376_s19 }
 0x161   : > { %1283 = vrot.lane.b32.xlu1 %v2589_v36, %s2378_s25  ;;  %769 = vrot.lane.b32.xlu0 %v735_v47, %s2377_s20  ;;  %v1205_v47 = vmul.f32 %v2631_v54, %v2598_v40  ;;  %v1350_v36 = vld [vmem:[%s3529_s4 + $0x10] sm:$0xff] }
 0x165   : > { %1289 = vrot.lane.b32.xlu1 %v2598_v40, %s2378_s25  ;;  %1226 = vrot.lane.b32.xlu0 %v1198_v15, %s2379_s12  ;;  %v567_v15 = vand.u32 127, %v566_v30 }
 0x167   : > { %v882_v20 = vpop.permute.xlu0 %881  ;;  %v624_v29 = vpop.permute.xlu1 %623  ;;  %v568_v40 = vadd.s32 128, %v567_v15  ;;  %v573_v4 = vand.u32 15, %v567_v15 }
 0x169   : > { %1234 = vrot.lane.b32.xlu1 %v1202_v43, %s2379_s12  ;;  %1267 = vrot.lane.b32.xlu0 %v2700_v25, %s2378_s25  ;;  %v580_v44 = vand.u32 15, %v568_v40  ;;  %vm2928_vm6 = vcmp.gt.s32.totalorder %v573_v4, 0  ;;  %vm2940_vm8 = vcmp.lt.s32.totalorder %v573_v4, 15  ;;  %v904_v4 = vsel %vm903_vm5, %v2315_v35, %v882_v20 }
 0x16b   : > { %v1098_v46 = vpop.permute.xlu0 %1097  ;;  %v801_v9 = vpop.permute.xlu1 %800  ;;  %vm2933_vm7 = vcmp.gt.s32.totalorder %v580_v44, 0  ;;  %vm2948_vm9 = vcmp.lt.s32.totalorder %v580_v44, 15 }
 0x16d   : > { %1240 = vrot.lane.b32.xlu1 %v1205_v47, %s2379_s12  ;;  %1218 = vrot.lane.b32.xlu0 %v1194_v31, %s2379_s12  ;;  %v1203_v31 = vmul.f32 %v2631_v54, %v2732_v23 }
 0x16f   : > { %v626_v43 = vpop.permute.xlu0 %625  ;;  %v1017_v16 = vpop.permute.xlu1 %1016 }
 0x170   : > { %v646_v60 = vsel %vm544_vm0, %v624_v29, %v626_v43  ;;  %v2294_v43 = vunpack.i.l.bf16 %v2666_v3 }
 0x171   : > { %1285 = vrot.lane.b32.xlu1 %v2732_v23, %s2378_s25  ;;  %1364 = vperm.xlu0 %2335, %v1350_v36   ;;  %v1385_v36 = vld [vmem:[%s3531_s6 + $0x8] sm:$0xff] }
 0x173   : > { %v1019_v51 = vpop.permute.xlu0 %1018  ;;  %v803_v47 = vpop.permute.xlu1 %802 }
 0x174   : > { %v2913_v28 = vsel %vm1040_vm2, %v1017_v16, %v1019_v51  ;;  %v824_v30 = vsel %vm822_vm3, %v801_v9, %v803_v47 }
 0x175   : > { %1236 = vrot.lane.b32.xlu1 %v1203_v31, %s2379_s12  ;;  %1281 = vrot.lane.b32.xlu0 %v2722_v55, %s2378_s25  ;;  %v645_v31 = vsel %vm544_vm0, %v2294_v43, %v624_v29  ;;  %v1387_v29 = vld [vmem:[%s3531_s6 + $0x18] sm:$0xff]  ;;  %v840_v44 = vsel %vm2948_vm9, %v824_v30, 0.0 }
 0x176   : > { %v661_v26 = vsel %vm2928_vm6, %v645_v31, 0.0 }
 0x177   : > { %v1100_v23 = vpop.permute.xlu0 %1099  ;;  %v884_v16 = vpop.permute.xlu1 %883  ;;  %v693_v35 = vmul.f32 %v2865_v34, %v661_v26  ;;  %v1042_v26 = vsel %vm1040_vm2, %v1019_v51, %v2712_v39 }
 0x178   : > { %v2925_v15 = vsel %vm1121_vm4, %v1098_v46, %v1100_v23  ;;  %v905_v40 = vsel %vm903_vm5, %v882_v20, %v884_v16  ;;  %v823_v16 = vsel %vm822_vm3, %v2302_v62, %v801_v9  ;;  %v662_v62 = vsel %vm2933_vm7, %v646_v60, 0.0  ;;  %v1380_v46 = vld [vmem:[%s3530_s5] sm:$0xff] }
 0x179   : > { %1395 = vperm.xlu1 %2336, %v1385_v36   ;;  %1287 = vrot.lane.b32.xlu0 %v2734_v38, %s2378_s25  ;;  %v839_v9 = vsel %vm2940_vm8, %v823_v16, 0.0  ;;  %v694_v20 = vmul.f32 %v2865_v34, %v662_v62  ;;  %v1204_v16 = vmul.f32 %v2631_v54, %v2734_v38  ;;  %v864_v34 = vmul.f32 %v2645_v59, %v840_v44 }
 0x17a   : > { %v1058_v39 = vsel %vm2948_vm9, %v1042_v26, 0.0 }
 0x17b   : > { %v2952_v36 = vpop.permute.xlu0 %1269  ;;  %v754_v41 = vpop.permute.xlu1 %753 }
 0x17c   : > { %3587 = vst [vmem:[#allocation27_spill] sm:$0xff] %v2952_v36  ;;  %v920_v36 = vsel %vm2928_vm6, %v904_v4, 0.0 }
 0x17d   : > { %1405 = vperm.xlu1 %2336, %v1387_v29   ;;  %1232 = vrot.lane.b32.xlu0 %v1201_v22, %s2379_s12  ;;  %v863_v29 = vmul.f32 %v2645_v59, %v839_v9  ;;  %v921_v22 = vsel %vm2933_vm7, %v905_v40, 0.0  ;;  %v944_v54 = vmul.f32 %v2637_v56, %v920_v36  ;;  %v1123_v9 = vsel %vm1121_vm4, %v1100_v23, %v2769_v37 }
 0x17e   : > { %v945_v40 = vmul.f32 %v2637_v56, %v921_v22  ;;  %v1057_v59 = vsel %vm2940_vm8, %v2913_v28, 0.0  ;;  %v977_v23 = vmul.f32 %v2672_v6, %v2702_v27  ;;  %v976_v56 = vmul.f32 %v2672_v6, %v2700_v25 }
 0x17f   : > { %v2970_v31 = vpop.permute.xlu1 %629  ;;  %v752_v60 = vpop.permute.xlu0 %751  ;;  %v1139_v28 = vsel %vm2933_vm7, %v1123_v9, 0.0  ;;  %v1081_v37 = vmul.f32 %v2680_v10, %v1057_v59  ;;  %v1082_v27 = vmul.f32 %v2680_v10, %v1058_v39 }
 0x180   : > { %v774_v30 = vsel %vm773_vm10, %v2873_v42, %v752_v60  ;;  %v775_v4 = vsel %vm773_vm10, %v752_v60, %v754_v41  ;;  %v1163_v25 = vmul.f32 %v2696_v18, %v1139_v28  ;;  %v2316_v28 = vunpack.i.h.bf16 %v2688_v14 }
 0x181   : > { %v790_v62 = vadd.f32 %v774_v30, %v693_v35  ;;  %v791_v24 = vadd.f32 %v775_v4, %v694_v20  ;;  %1238 = vrot.lane.b32.xlu0 %v1204_v16, %s2379_s12 }
 0x183   : > { %v871_v38 = vadd.f32 %v863_v29, %v790_v62  ;;  %v872_v42 = vadd.f32 %v864_v34, %v791_v24  ;;  %v2988_v5 = vpop.permute.xlu1 %1103  ;;  %v2990_v41 = vpop.permute.xlu0 %1220  ;;  %v1138_v24 = vsel %vm2928_vm6, %v2925_v15, 0.0 }
 0x184   : > { %v1162_v6 = vmul.f32 %v2696_v18, %v1138_v24  ;;  %v1244_v4 = vsel %vm1242_vm11, %v2990_v41, %v2886_v48  ;;  %v1386_v18 = vld [vmem:[%s3531_s6 + $0x10] sm:$0xff]  ;;  %v2295_v48 = vunpack.i.h.bf16 %v2666_v3 }
 0x185   : > { %v952_v51 = vadd.f32 %v944_v54, %v871_v38  ;;  %v953_v36 = vadd.f32 %v945_v40, %v872_v42  ;;  %1279 = vrot.lane.b32.xlu0 %v2720_v49, %s2378_s25  ;;  %v1200_v38 = vmul.f32 %v2626_v52, %v2720_v49  ;;  %v1384_v52 = vld [vmem:[%s3531_s6] sm:$0xff] }
 0x187   : > { %v985_v44 = vadd.f32 %v977_v23, %v953_v36  ;;  %v809_v35 = vpop.permute.xlu1 %808  ;;  %v807_v20 = vpop.permute.xlu0 %806  ;;  %v984_v60 = vadd.f32 %v976_v56, %v952_v51  ;;  %v2303_v23 = vunpack.i.h.bf16 %v2643_v58  ;;  %v647_v56 = vsel %vm544_vm0, %v2295_v48, %v2970_v31 }
 0x188   : > { %v826_v3 = vsel %vm822_vm3, %v807_v20, %v809_v35 }
 0x189   : > { %v1090_v15 = vadd.f32 %v1082_v27, %v985_v44  ;;  %1230 = vrot.lane.b32.xlu0 %v1200_v38, %s2379_s12  ;;  %v1089_v16 = vadd.f32 %v1081_v37, %v984_v60  ;;  %v825_v38 = vsel %vm822_vm3, %v2303_v23, %v807_v20  ;;  %v663_v44 = vsel %vm2928_vm6, %v647_v56, 0.0 }
 0x18a   : > { %v841_v14 = vsel %vm2940_vm8, %v825_v38, 0.0  ;;  %v695_v35 = vmul.f32 %v2639_v57, %v663_v44  ;;  %v978_v38 = vmul.f32 %v2659_v0, %v2708_v32 }
 0x18b   : > { %v1171_v29 = vadd.f32 %v1163_v25, %v1090_v15  ;;  %v890_v22 = vpop.permute.xlu1 %889  ;;  %v888_v10 = vpop.permute.xlu0 %887  ;;  %v3018_v30 = vadd.f32 %v1162_v6, %v1089_v16 }
 0x18c   : > { %v906_v58 = vsel %vm903_vm5, %v2316_v28, %v888_v10  ;;  %v907_v6 = vsel %vm903_vm5, %v888_v10, %v890_v22  ;;  %v865_v10 = vmul.f32 %v2621_v50, %v841_v14 }
 0x18d   : > { %v3023_v26 = vadd.f32 %v1244_v4, %v1171_v29  ;;  %1390 = vperm.xlu0 %2335, %v1384_v52   ;;  %v922_v20 = vsel %vm2928_vm6, %v906_v58, 0.0  ;;  %v923_v52 = vsel %vm2933_vm7, %v907_v6, 0.0 }
 0x18f   : > { %v760_v34 = vpop.permute.xlu1 %759  ;;  %v1023_v62 = vpop.permute.xlu0 %1022 }
 0x191   : > { %1400 = vperm.xlu0 %2335, %v1386_v18  }
 0x193   : > { %v3028_v54 = vpop.permute.xlu1 %812  ;;  %v632_v9 = vpop.permute.xlu0 %631 }
 0x194   : > { %v648_v24 = vsel %vm544_vm0, %v2970_v31, %v632_v9  ;;  %v842_v31 = vsel %vm2948_vm9, %v826_v3, 0.0  ;;  %v946_v9 = vmul.f32 %v2662_v1, %v922_v20 }
 0x195   : > { %v664_v60 = vsel %vm2933_vm7, %v648_v24, 0.0  ;;  %v866_v4 = vmul.f32 %v2621_v50, %v842_v31 }
 0x196   : > { %v696_v25 = vmul.f32 %v2639_v57, %v664_v60  ;;  %v947_v57 = vmul.f32 %v2662_v1, %v923_v52  ;;  %v979_v1 = vmul.f32 %v2659_v0, %v2710_v33  ;;  %v2310_v33 = vunpack.i.l.bf16 %v2664_v2 }
 0x197   : > { %v638_v40 = vpop.permute.xlu1 %637  ;;  %v3030_v42 = vpop.permute.xlu0 %1024 }
 0x198   : > { %v1043_v59 = vsel %vm1040_vm2, %v1023_v62, %v3030_v42 }
 0x19b   : > { %v815_v39 = vpop.permute.xlu1 %814  ;;  %v3035_v51 = vpop.permute.xlu0 %1105 }
 0x19c   : > { %v3039_v36 = vsel %vm822_vm3, %v3028_v54, %v815_v39  ;;  %v1124_v48 = vsel %vm1121_vm4, %v2988_v5, %v3035_v51 }
 0x19d   : > { %v1140_v5 = vsel %vm2928_vm6, %v1124_v48, 0.0 }
 0x19e   : > { %v1164_v6 = vmul.f32 %v2682_v11, %v1140_v5 }
 0x19f   : > { %v896_v37 = vpop.permute.xlu1 %895  ;;  %v3049_v27 = vpop.permute.xlu0 %1275 }
 0x1a3   : > { %v3065_v15 = vpop.permute.xlu1 %1111  ;;  %v758_v16 = vpop.permute.xlu0 %757 }
 0x1a4   : > { %v776_v29 = vsel %vm773_vm10, %v2802_v63, %v758_v16  ;;  %v777_v22 = vsel %vm773_vm10, %v758_v16, %v760_v34  ;;  %v1059_v34 = vsel %vm2940_vm8, %v1043_v59, 0.0  ;;  %v1127_v5 = vsel %vm1121_vm4, %v3065_v15, %v2845_v19  ;;  %v3588_v19 = vld [vmem:[#allocation6_spill] sm:$0xff] }
 0x1a5   : > { %v792_v18 = vadd.f32 %v776_v29, %v695_v35  ;;  %v793_v62 = vadd.f32 %v777_v22, %v696_v25  ;;  %v1083_v3 = vmul.f32 %v2684_v12, %v1059_v34  ;;  %v2322_v35 = vunpack.i.l.bf16 %v2674_v7 }
 0x1a6   : > { %v2330_v29 = vunpack.i.l.bf16 %v2686_v13 }
 0x1a7   : > { %v873_v39 = vadd.f32 %v865_v10, %v792_v18  ;;  %v874_v23 = vadd.f32 %v866_v4, %v793_v62  ;;  %v766_v56 = vpop.permute.xlu1 %765  ;;  %v636_v63 = vpop.permute.xlu0 %635  ;;  %v827_v16 = vsel %vm822_vm3, %v2322_v35, %v3028_v54  ;;  %v3589_v35 = vld [vmem:[#allocation11_spill] sm:$0xff] }
 0x1a8   : > { %v650_v24 = vsel %vm544_vm0, %v636_v63, %v638_v40  ;;  %v843_v10 = vsel %vm2940_vm8, %v827_v16, 0.0 }
 0x1a9   : > { %v954_v50 = vadd.f32 %v946_v9, %v873_v39  ;;  %v955_v28 = vadd.f32 %v947_v57, %v874_v23  ;;  %v666_v18 = vsel %vm2933_vm7, %v650_v24, 0.0  ;;  %v844_v9 = vsel %vm2948_vm9, %v3039_v36, 0.0 }
 0x1aa   : > { %v867_v57 = vmul.f32 %v2628_v53, %v843_v10  ;;  %v698_v39 = vmul.f32 %v2651_v61, %v666_v18  ;;  %v3590_v10 = vld [vmem:[#allocation15_spill] sm:$0xff] }
 0x1ab   : > { %v3089_v44 = vpop.permute.xlu1 %1034  ;;  %v894_v58 = vpop.permute.xlu0 %893  ;;  %v986_v60 = vadd.f32 %v978_v38, %v954_v50  ;;  %v3091_v59 = vadd.f32 %v979_v1, %v955_v28  ;;  %v868_v28 = vmul.f32 %v2628_v53, %v844_v9 }
 0x1ac   : > { %v909_v40 = vsel %vm903_vm5, %v894_v58, %v896_v37  ;;  %v649_v37 = vsel %vm544_vm0, %v2310_v33, %v636_v63  ;;  %v908_v54 = vsel %vm903_vm5, %v2330_v29, %v894_v58 }
 0x1ad   : > { %v1091_v14 = vadd.f32 %v1083_v3, %v986_v60  ;;  %v665_v4 = vsel %vm2928_vm6, %v649_v37, 0.0  ;;  %v924_v34 = vsel %vm2928_vm6, %v908_v54, 0.0  ;;  %v925_v24 = vsel %vm2933_vm7, %v909_v40, 0.0 }
 0x1ae   : > { %v697_v48 = vmul.f32 %v2651_v61, %v665_v4  ;;  %v948_v3 = vmul.f32 %v2676_v8, %v924_v34  ;;  %v949_v58 = vmul.f32 %v2676_v8, %v925_v24  ;;  %v980_v8 = vmul.f32 %v3588_v19, %v2720_v49 }
 0x1af   : > { %v3095_v32 = vpop.permute.xlu1 %1115  ;;  %v1029_v31 = vpop.permute.xlu0 %1028  ;;  %v3097_v0 = vadd.f32 %v1164_v6, %v1091_v14  ;;  %v2323_v34 = vunpack.i.h.bf16 %v2674_v7  ;;  %v3593_v7 = vld [vmem:[#allocation24_spill] sm:$0xff] }
 0x1b3   : > { %v1110_v20 = vpop.permute.xlu0 %1109  ;;  %v3106_v52 = vpop.permute.xlu1 %643 }
 0x1b4   : > { %v1126_v25 = vsel %vm1121_vm4, %v1110_v20, %v3065_v15  ;;  %v981_v15 = vmul.f32 %v3588_v19, %v2722_v55 }
 0x1b5   : > { %v1142_v33 = vsel %vm2928_vm6, %v1126_v25, 0.0 }
 0x1b6   : > { %v1166_v55 = vmul.f32 %v3590_v10, %v1142_v33 }
 0x1b7   : > { %v1031_v22 = vpop.permute.xlu0 %1030  ;;  %v3123_v23 = vpop.permute.xlu1 %820 }
 0x1b8   : > { %v1045_v62 = vsel %vm1040_vm2, %v1029_v31, %v1031_v22  ;;  %v1046_v38 = vsel %vm1040_vm2, %v1031_v22, %v2786_v45  ;;  %v1143_v31 = vsel %vm2933_vm7, %v1127_v5, 0.0 }
 0x1b9   : > { %v1061_v53 = vsel %vm2940_vm8, %v1045_v62, 0.0  ;;  %v1062_v45 = vsel %vm2948_vm9, %v1046_v38, 0.0  ;;  %v1167_v4 = vmul.f32 %v3590_v10, %v1143_v31  ;;  %v3597_v31 = vld [vmem:[#allocation20_spill] sm:$0xff] }
 0x1ba   : > { %v1085_v20 = vmul.f32 %v3589_v35, %v1061_v53  ;;  %v1086_v16 = vmul.f32 %v3589_v35, %v1062_v45  ;;  %v3595_v53 = vld [vmem:[#allocation25_spill] sm:$0xff]  ;;  %v3599_v10 = vld [vmem:[#allocation16_spill] sm:$0xff] }
 0x1bb   : > { %v764_v63 = vpop.permute.xlu0 %763  ;;  %v1295_v45 = vsel %vm1291_vm12, %v3049_v27, %v3595_v53 }
 0x1bc   : > { %v778_v50 = vsel %vm773_vm10, %v2811_v21, %v764_v63  ;;  %v779_v36 = vsel %vm773_vm10, %v764_v63, %v766_v56  ;;  %v3146_v56 = vpop.permute.xlu1 %901 }
 0x1bd   : > { %v794_v61 = vadd.f32 %v778_v50, %v697_v48  ;;  %v795_v1 = vadd.f32 %v779_v36, %v698_v39  ;;  %v3591_v48 = vld [vmem:[#allocation12_spill] sm:$0xff] }
 0x1be   : > { %v1044_v39 = vsel %vm1040_vm2, %v3030_v42, %v3591_v48 }
 0x1bf   : > { %v875_v60 = vadd.f32 %v867_v57, %v794_v61  ;;  %v876_v40 = vadd.f32 %v868_v28, %v795_v1  ;;  %v3140_v21 = vpop.permute.xlu0 %641  ;;  %v2311_v57 = vunpack.i.h.bf16 %v2664_v2  ;;  %v1060_v36 = vsel %vm2948_vm9, %v1044_v39, 0.0  ;;  %v3592_v2 = vld [vmem:[#allocation18_spill] sm:$0xff]  ;;  %v3594_v1 = vld [vmem:[#allocation27_spill] sm:$0xff] }
 0x1c0   : > { %v1229_v62 = vpop.permute.xlu1 %1228  ;;  %v2331_v28 = vunpack.i.h.bf16 %v2686_v13  ;;  %v1125_v38 = vsel %vm1121_vm4, %v3035_v51, %v3592_v2  ;;  %v1293_v5 = vsel %vm1291_vm12, %v3594_v1, %v3593_v7  ;;  %v3603_v2 = vld [vmem:[#allocation17_spill] sm:$0xff] }
 0x1c1   : > { %v956_v6 = vadd.f32 %v948_v3, %v875_v60  ;;  %v957_v14 = vadd.f32 %v949_v58, %v876_v40  ;;  %v651_v24 = vsel %vm544_vm0, %v2311_v57, %v3140_v21  ;;  %v1084_v58 = vmul.f32 %v2684_v12, %v1060_v36  ;;  %v3602_v36 = vld [vmem:[#allocation9_spill] sm:$0xff] }
 0x1c2   : > { %v667_v3 = vsel %vm2928_vm6, %v651_v24, 0.0  ;;  %v1141_v51 = vsel %vm2933_vm7, %v1125_v38, 0.0  ;;  %v1309_v40 = vsel %vm2948_vm9, %v1293_v5, 0.0  ;;  %v3601_v24 = vld [vmem:[#allocation13_spill] sm:$0xff] }
 0x1c3   : > { %v3158_v37 = vpop.permute.xlu0 %818  ;;  %v989_v29 = vadd.f32 %v981_v15, %v957_v14  ;;  %v988_v22 = vadd.f32 %v980_v8, %v956_v6  ;;  %v3596_v6 = vld [vmem:[#allocation4_spill] sm:$0xff]  ;;  %v1092_v15 = vadd.f32 %v1084_v58, %v3091_v59  ;;  %v1165_v35 = vmul.f32 %v2682_v11, %v1141_v51 }
 0x1c4   : > { %v3177_v50 = vpop.permute.xlu1 %771  ;;  %v829_v42 = vsel %vm822_vm3, %v2323_v34, %v3158_v37  ;;  %v699_v14 = vmul.f32 %v3596_v6, %v667_v3  ;;  %v1311_v59 = vsel %vm2948_vm9, %v1295_v45, 0.0 }
 0x1c5   : > { %v1094_v18 = vadd.f32 %v1086_v16, %v989_v29  ;;  %v1093_v49 = vadd.f32 %v1085_v20, %v988_v22  ;;  %v845_v60 = vsel %vm2940_vm8, %v829_v42, 0.0  ;;  %v3598_v20 = vld [vmem:[#allocation5_spill] sm:$0xff]  ;;  %v1173_v11 = vadd.f32 %v1165_v35, %v1092_v15  ;;  %v3607_v15 = vld [vmem:[#allocation26_spill] sm:$0xff] }
 0x1c6   : > { %v869_v16 = vmul.f32 %v3598_v20, %v845_v60  ;;  %v1335_v38 = vmul.f32 %v3603_v2, %v1311_v59 }
 0x1c7   : > { %v3162_v54 = vpop.permute.xlu0 %899  ;;  %v3164_v9 = vadd.f32 %v1167_v4, %v1094_v18  ;;  %v3166_v25 = vadd.f32 %v1166_v55, %v1093_v49  ;;  %v1333_v4 = vmul.f32 %v3599_v10, %v1309_v40  ;;  %v3600_v55 = vld [vmem:[#allocation3_spill] sm:$0xff] }
 0x1c8   : > { %v910_v13 = vsel %vm903_vm5, %v2331_v28, %v3162_v54  ;;  %v1274_v19 = vpop.permute.xlu1 %1273  ;;  %v982_v28 = vmul.f32 %v3602_v36, %v3601_v24  ;;  %v911_v24 = vsel %vm903_vm5, %v3162_v54, %v3146_v56 }
 0x1c9   : > { %v926_v8 = vsel %vm2928_vm6, %v910_v13, 0.0  ;;  %v1341_v34 = vadd.f32 %v1333_v4, %v3023_v26  ;;  %v1294_v42 = vsel %vm1291_vm12, %v1274_v19, %v3049_v27  ;;  %v3604_v13 = vld [vmem:[#allocation7_spill] sm:$0xff]  ;;  %v3605_v27 = vld [vmem:[#allocation22_spill] sm:$0xff] }
 0x1ca   : > { %v950_v18 = vmul.f32 %v3600_v55, %v926_v8  ;;  %v1310_v40 = vsel %vm2940_vm8, %v1294_v42, 0.0 }
 0x1cb   : > { %v3172_v63 = vpop.permute.xlu0 %1036  ;;  %v1373_v45 = vadd.f32 %v3605_v27, %v1341_v34 }
 0x1cc   : > { %v1047_v29 = vsel %vm1040_vm2, %v3089_v44, %v3172_v63  ;;  %v1225_v7 = vpop.permute.xlu1 %1224 }
 0x1cd   : > { %v1063_v39 = vsel %vm2940_vm8, %v1047_v29, 0.0 }
 0x1cf   : > { %v3187_v61 = vpop.permute.xlu0 %1117 }
 0x1d0   : > { %v1128_v49 = vsel %vm1121_vm4, %v3095_v32, %v3187_v61 }
 0x1d1   : > { %v1144_v3 = vsel %vm2928_vm6, %v1128_v49, 0.0 }
 0x1d3   : > { %v770_v12 = vpop.permute.xlu0 %769 }
 0x1d4   : > { %v780_v33 = vsel %vm773_vm10, %v3597_v31, %v770_v12 }
 0x1d5   : > { %v796_v22 = vadd.f32 %v780_v33, %v699_v14  ;;  %v3606_v14 = vld [vmem:[#allocation8_spill] sm:$0xff] }
 0x1d6   : > { %v1168_v19 = vmul.f32 %v3606_v14, %v1144_v3  ;;  %v3609_v3 = vld [vmem:[#allocation14_spill] sm:$0xff] }
 0x1d7   : > { %v877_v57 = vadd.f32 %v869_v16, %v796_v22  ;;  %v1227_v48 = vpop.permute.xlu0 %1226  ;;  %v1334_v16 = vmul.f32 %v3603_v2, %v1310_v40  ;;  %v983_v56 = vmul.f32 %v3602_v36, %v3609_v3 }
 0x1d8   : > { %v1246_v44 = vsel %vm1242_vm11, %v1227_v48, %v1229_v62  ;;  %v1245_v58 = vsel %vm1242_vm11, %v1225_v7, %v1227_v48  ;;  %v1087_v62 = vmul.f32 %v3604_v13, %v1063_v39 }
 0x1d9   : > { %v958_v32 = vadd.f32 %v950_v18, %v877_v57  ;;  %v1262_v5 = vadd.f32 %v1246_v44, %v1173_v11  ;;  %v1261_v47 = vadd.f32 %v1245_v58, %v3097_v0  ;;  %v652_v57 = vsel %vm544_vm0, %v3140_v21, %v3106_v52 }
 0x1da   : > { %v668_v44 = vsel %vm2933_vm7, %v652_v57, 0.0 }
 0x1db   : > { %v1268_v51 = vpop.permute.xlu0 %1267  ;;  %v1343_v26 = vadd.f32 %v1335_v38, %v1262_v5  ;;  %v990_v60 = vadd.f32 %v982_v28, %v958_v32  ;;  %v1342_v59 = vadd.f32 %v1334_v16, %v1261_v47  ;;  %v700_v34 = vmul.f32 %v3596_v6, %v668_v44  ;;  %v3608_v6 = vld [vmem:[#allocation19_spill] sm:$0xff]  ;;  %v3611_v47 = vld [vmem:[#allocation10_spill] sm:$0xff] }
 0x1dc   : > { %v1292_v53 = vsel %vm1291_vm12, %v1268_v51, %v3594_v1  ;;  %v3247_v35 = vpop.permute.xlu1 %1369  ;;  %v1048_v42 = vsel %vm1040_vm2, %v3172_v63, %v3608_v6 }
 0x1dd   : > { %v1375_v8 = vadd.f32 %v3607_v15, %v1343_v26  ;;  %v1095_v31 = vadd.f32 %v1087_v62, %v990_v60  ;;  %v1308_v33 = vsel %vm2940_vm8, %v1292_v53, 0.0  ;;  %v1374_v39 = vadd.f32 %v3607_v15, %v1342_v59 }
 0x1de   : > { %v1332_v0 = vmul.f32 %v3599_v10, %v1308_v33  ;;  %v830_v10 = vsel %vm822_vm3, %v3158_v37, %v3123_v23  ;;  %v927_v23 = vsel %vm2933_vm7, %v911_v24, 0.0  ;;  %v1064_v54 = vsel %vm2948_vm9, %v1048_v42, 0.0 }
 0x1df   : > { %v1219_v29 = vpop.permute.xlu0 %1218  ;;  %v2207_v22 = vpack.c.bf16 %v1375_v8, %v1373_v45  ;;  %v3250_v4 = vadd.f32 %v1168_v19, %v1095_v31  ;;  %v846_v21 = vsel %vm2948_vm9, %v830_v10, 0.0 }
 0x1e0   : > { %v1243_v1 = vsel %vm1242_vm11, %v1219_v29, %v2990_v41  ;;  %v1284_v11 = vpop.permute.xlu1 %1283  ;;  %v870_v2 = vmul.f32 %v3598_v20, %v846_v21  ;;  %v3610_v20 = vld [vmem:[#allocation23_spill] sm:$0xff]  ;;  %v3612_v29 = vld [vmem:[#allocation21_spill] sm:$0xff] }
 0x1e1   : > { %v1259_v18 = vadd.f32 %v1243_v1, %v3018_v30  ;;  %2208 = vmatprep.subr.bf16.mxu1 %v2207_v22  ;;  %v781_v30 = vsel %vm773_vm10, %v770_v12, %v3177_v50  ;;  %v951_v12 = vmul.f32 %v3600_v55, %v927_v23  ;;  %v1129_v58 = vsel %vm1121_vm4, %v3187_v61, %v3610_v20  ;;  %v1383_v23 = vld [vmem:[%s3530_s5 + $0x18] sm:$0xff] }
 0x1e2   : > { %v797_v28 = vadd.f32 %v781_v30, %v700_v34  ;;  %v1088_v55 = vmul.f32 %v3604_v13, %v1064_v54  ;;  %v1145_v63 = vsel %vm2933_vm7, %v1129_v58, 0.0 }
 0x1e3   : > { %v1340_v49 = vadd.f32 %v1332_v0, %v1259_v18  ;;  %v1169_v61 = vmul.f32 %v3606_v14, %v1145_v63 }
 0x1e4   : > { %v1290_v52 = vpop.permute.xlu1 %1289  ;;  %v878_v37 = vadd.f32 %v870_v2, %v797_v28  ;;  %v3321_v2 = vld [vmem:[#allocation2] sm:$0xff] }
 0x1e5   : > { %v1372_v48 = vadd.f32 %v3605_v27, %v1340_v49  ;;  %2188 = vmatprep.mubr.msk.f32.mxu0 %vm2381_vm13, %v3321_v2 }
 0x1e6   : > { %v959_v7 = vadd.f32 %v951_v12, %v878_v37 }
 0x1e7   : > { %v2209_v41 = vpack.c.bf16 %v1374_v39, %v1372_v48 }
 0x1e8   : > { %v1235_v38 = vpop.permute.xlu1 %1234  ;;  %v991_v51 = vadd.f32 %v983_v56, %v959_v7 }
 0x1e9   : > { %2210 = vmatpush1.bf16.msra.mxu1 %v2209_v41 }
 0x1ea   : > { %v1096_v53 = vadd.f32 %v1088_v55, %v991_v51 }
 0x1ec   : > { %v1241_v5 = vpop.permute.xlu1 %1240  ;;  %v1177_v15 = vadd.f32 %v1169_v61, %v1096_v53 }
 0x1f0   : > { %v1365_v50 = vpop.permute.xlu0 %1364  ;;  %v1286_v60 = vpop.permute.xlu1 %1285 }
 0x1f4   : > { %v1282_v32 = vpop.permute.xlu0 %1281  ;;  %v1237_v33 = vpop.permute.xlu1 %1236 }
 0x1f5   : > { %v1297_v26 = vsel %vm1291_vm12, %v1282_v32, %v1284_v11 }
 0x1f6   : > { %v1313_v27 = vsel %vm2948_vm9, %v1297_v26, 0.0 }
 0x1f7   : > { %v1337_v17 = vmul.f32 %v3611_v47, %v1313_v27 }
 0x1f8   : > { %v1288_v62 = vpop.permute.xlu0 %1287  ;;  %v1396_v7 = vpop.permute.xlu1 %1395 }
 0x1f9   : > { %v1299_v40 = vsel %vm1291_vm12, %v1288_v62, %v1290_v52  ;;  %v1298_v16 = vsel %vm1291_vm12, %v1286_v60, %v1288_v62 }
 0x1fa   : > { %v1315_v13 = vsel %vm2948_vm9, %v1299_v40, 0.0  ;;  %v1314_v43 = vsel %vm2940_vm8, %v1298_v16, 0.0 }
 0x1fb   : > { %v1339_v22 = vmul.f32 %v3612_v29, %v1315_v13  ;;  %v1338_v39 = vmul.f32 %v3612_v29, %v1314_v43 }
 0x1fc   : > { %v1233_v36 = vpop.permute.xlu0 %1232  ;;  %v1406_v53 = vpop.permute.xlu1 %1405 }
 0x1fd   : > { %v1248_v45 = vsel %vm1242_vm11, %v1233_v36, %v1235_v38 }
 0x1fe   : > { %v1264_v19 = vadd.f32 %v1248_v45, %v3164_v9 }
 0x200   : > { %v1239_v8 = vpop.permute.xlu0 %1238  ;;  %v1345_v1 = vadd.f32 %v1337_v17, %v1264_v19 }
 0x201   : > { %v1250_v31 = vsel %vm1242_vm11, %v1239_v8, %v1241_v5  ;;  %v1249_v14 = vsel %vm1242_vm11, %v1237_v33, %v1239_v8 }
 0x202   : > { %v1266_v59 = vadd.f32 %v1250_v31, %v1177_v15  ;;  %v1265_v49 = vadd.f32 %v1249_v14, %v3250_v4  ;;  %v1377_v57 = vadd.f32 %v1365_v50, %v1345_v1  ;;  %v2380_v31 = vmov 0.0|0.0  }
 0x203   : > { %2215 = vmatprep.subr.bf16.mxu0 %v2380_v31 }
 0x204   : > { %v1347_v0 = vadd.f32 %v1339_v22, %v1266_v59  ;;  %v1280_v9 = vpop.permute.xlu0 %1279  ;;  %v1346_v30 = vadd.f32 %v1338_v39, %v1265_v49  ;;  %v1608_v49 = vld [vmem:[%s3533_s8] sm:$0xff]  ;;  %v1609_v39 = vld [vmem:[%s3533_s8 + $0x8] sm:$0xff] }
 0x205   : > { %v1296_v18 = vsel %vm1291_vm12, %v1280_v9, %v1282_v32 }
 0x206   : > { %v1379_v11 = vadd.f32 %v3247_v35, %v1347_v0  ;;  %v1312_v48 = vsel %vm2940_vm8, %v1296_v18, 0.0  ;;  %v1378_v24 = vadd.f32 %v3247_v35, %v1346_v30  ;;  %v1382_v35 = vld [vmem:[%s3530_s5 + $0x10] sm:$0xff]  ;;  %v1533_v18 = vld [vmem:[%s3532_s7] sm:$0x3] }
 0x207   : > { %v1336_v34 = vmul.f32 %v3611_v47, %v1312_v48 }
 0x208   : > { %v1231_v44 = vpop.permute.xlu0 %1230  ;;  %v2211_v41 = vpack.c.bf16 %v1379_v11, %v1377_v57 }
 0x209   : > { %v1247_v10 = vsel %vm1242_vm11, %v1231_v44, %v1233_v36  ;;  %v1610_v44 = vld [vmem:[%s3533_s8 + $0x10] sm:$0xff] }
 0x20a   : > { %v1263_v52 = vadd.f32 %v1247_v10, %v3166_v25  ;;  %2212 = vmatprep.subr.bf16.mxu1 %v2211_v41  ;;  %v1381_v25 = vld [vmem:[%s3530_s5 + $0x8] sm:$0xff]  ;;  %v1611_v41 = vld [vmem:[%s3533_s8 + $0x18] sm:$0xff] }
 0x20c   : > { %v1344_v21 = vadd.f32 %v1336_v34, %v1263_v52  ;;  %v1391_v37 = vpop.permute.xlu0 %1390 }
 0x20e   : > { %v1376_v4 = vadd.f32 %v1365_v50, %v1344_v21 }
 0x210   : > { %v2213_v28 = vpack.c.bf16 %v1378_v24, %v1376_v4  ;;  %v1401_v62 = vpop.permute.xlu0 %1400 }
 0x212   : > { %2214 = vmatpush1.bf16.msra.mxu1 %v2213_v28 }
 0x215   : > { %2140 = vmatmul.mubr.msk.f32.vlgmr.msra.gmra.mrb[0].mxu1 %vm431_vm1, %v1380_v46 }
 0x216   : > { %1490 = vmatprep.mubr.f32.mxu1 %v3321_v2 }
 0x219   : > { %2141 = vmatmul.mubr.msk.f32.gmra.mrb[2].mxu1 %vm431_vm1, %v1381_v25 }
 0x21a   : > { %1496 = vmatprep.mubr.f32.mxu1 %v3321_v2 }
 0x21d   : > { %2142 = vmatmul.mubr.msk.f32.gmra.mrb[4].mxu1 %vm431_vm1, %v1382_v35 }
 0x21e   : > { %1502 = vmatprep.mubr.f32.mxu1 %v3321_v2 }
 0x221   : > { %2143 = vmatmul.mubr.msk.f32.gmra.mrb[6].mxu1 %vm431_vm1, %v1383_v23 }
 0x222   : > { %2193 = vmatprep.mubr.msk.f32.mxu1 %vm1612_vm14, %v1608_v49  ;;  %v1770_v49 = vld [vmem:[%s3534_s9 + $0x20] sm:$0xff] }
 0x2e8   : > { %v1486_v38 = vpop.f32.mrb[0].mxu1 }
 0x2e9   : > { %v3338_v50 = vadd.f32 %v1486_v38, %v1391_v37  ;;  %v1488_v12 = vpop.f32.mrb[1].mxu1 }
 0x2ea   : > { %v3340_v6 = vadd.f32 %v1488_v12, %v1391_v37 }
 0x2eb   : > { %v1509_v42 = vmax.f32 %v3338_v50, 0.0 }
 0x2ec   : > { %v1510_v32 = vmax.f32 %v3340_v6, 0.0  ;;  %v1492_v5 = vpop.f32.mrb[2].mxu1 }
 0x2ed   : > { %v3344_v3 = vadd.f32 %v1492_v5, %v1396_v7  ;;  %v1494_v56 = vpop.f32.mrb[3].mxu1 }
 0x2ee   : > { %v1517_v54 = vadd.f32 %v1510_v32, %v1509_v42  ;;  %v3350_v20 = vadd.f32 %v1494_v56, %v1396_v7 }
 0x2ef   : > { %v1511_v58 = vmax.f32 %v3344_v3, 0.0 }
 0x2f0   : > { %v1512_v51 = vmax.f32 %v3350_v20, 0.0  ;;  %v1498_v55 = vpop.f32.mrb[4].mxu1  ;;  %1518 = vadd.xlane.f32.xlu0 %v1517_v54 }
 0x2f1   : > { %v3354_v26 = vadd.f32 %v1498_v55, %v1401_v62  ;;  %v1500_v63 = vpop.f32.mrb[5].mxu1 }
 0x2f2   : > { %v1520_v60 = vadd.f32 %v1512_v51, %v1511_v58  ;;  %v3360_v40 = vadd.f32 %v1500_v63, %v1401_v62 }
 0x2f3   : > { %v1513_v36 = vmax.f32 %v3354_v26, 0.0  ;;  %v1776_v26 = vld [vmem:[%s3535_s10 + $0x10] sm:$0xff] }
 0x2f4   : > { %v1514_v27 = vmax.f32 %v3360_v40, 0.0  ;;  %v1504_v45 = vpop.f32.mrb[6].mxu1  ;;  %1521 = vadd.xlane.f32.xlu1 %v1520_v60  ;;  %v1777_v40 = vld [vmem:[%s3535_s10 + $0x18] sm:$0xff] }
 0x2f5   : > { %v3364_v61 = vadd.f32 %v1504_v45, %v1406_v53  ;;  %v1506_v19 = vpop.f32.mrb[7].mxu1  ;;  %v390_v45 = vld [vmem:[%s2479_s30 + $0x18] sm:$0xff] }
 0x2f6   : > { %v1523_v13 = vadd.f32 %v1514_v27, %v1513_v36  ;;  %v3370_v47 = vadd.f32 %v1506_v19, %v1406_v53  ;;  %v388_v53 = vld [vmem:[%s2479_s30 + $0x8] sm:$0xff] }
 0x2f7   : > { %v1515_v17 = vmax.f32 %v3364_v61, 0.0  ;;  %v1780_v61 = vld [vmem:[%s3535_s10 + $0x30] sm:$0xff] }
 0x2f8   : > { %v1516_v15 = vmax.f32 %v3370_v47, 0.0  ;;  %1524 = vadd.xlane.f32.xlu0 %v1523_v13  ;;  %v2229_v13 = vpack.c.bf16 %v390_v45, %v388_v53  ;;  %v1781_v47 = vld [vmem:[%s3535_s10 + $0x38] sm:$0xff] }
 0x2fa   : > { %v1526_v8 = vadd.f32 %v1516_v15, %v1515_v17 }
 0x2fc   : > { %1527 = vadd.xlane.f32.xlu0 %v1526_v8  ;;  %v387_v8 = vld [vmem:[%s2479_s30] sm:$0xff] }
 0x37d   : > { %v1519_v33 = vpop.xlane.xlu0 %1518 }
 0x37e   : > { %v1529_v29 = vmul.f32 0.00390625, %v1519_v33 }
 0x381   : > { %v1522_v16 = vpop.xlane.xlu1 %1521 }
 0x382   : > { %v1530_v22 = vmul.f32 0.00390625, %v1522_v16  ;;  %v392_v16 = vld [vmem:[%s2479_s30 + $0x28] sm:$0xff] }
 0x384   : > { %v2216_v1 = vpack.c.bf16 %v1530_v22, %v1529_v29  ;;  %v394_v29 = vld [vmem:[%s2479_s30 + $0x38] sm:$0xff] }
 0x385   : > { %v1525_v59 = vpop.xlane.xlu0 %1524  ;;  %v2233_v22 = vpack.c.bf16 %v394_v29, %v392_v16 }
 0x386   : > { %2217 = vmatpush3.bf16.msra.mxu0 %v2216_v1  ;;  %v1531_v0 = vmul.f32 0.00390625, %v1525_v59  ;;  %v391_v1 = vld [vmem:[%s2479_s30 + $0x20] sm:$0xff]  ;;  %v393_v59 = vld [vmem:[%s2479_s30 + $0x30] sm:$0xff] }
 0x387   : > { %2218 = vmatprep.subr.bf16.mxu0 %v2380_v31  ;;  %v389_v31 = vld [vmem:[%s2479_s30 + $0x10] sm:$0xff] }
 0x388   : > { %v2231_v33 = vpack.c.bf16 %v389_v31, %v387_v8 }
 0x389   : > { %v1528_v14 = vpop.xlane.xlu0 %1527 }
 0x38a   : > { %v1532_v9 = vmul.f32 0.00390625, %v1528_v14  ;;  %v2235_v14 = vpack.c.bf16 %v393_v59, %v391_v1 }
 0x38c   : > { %v2219_v43 = vpack.c.bf16 %v1532_v9, %v1531_v0  ;;  %v1766_v0 = vld [vmem:[%s3534_s9] sm:$0xff]  ;;  %v1767_v9 = vld [vmem:[%s3534_s9 + $0x8] sm:$0xff] }
 0x38e   : > { %2220 = vmatpush3.bf16.msra.mxu0 %v2219_v43  ;;  %v1768_v43 = vld [vmem:[%s3534_s9 + $0x10] sm:$0xff] }
 0x38f   : > { %2230 = vmatprep.subr.bf16.mxu0 %v2229_v13 }
 0x391   : > { %2189 = vmatmul.mubr.msk.f32.vlgmr.msra.gmra.mrb[8].mxu0 %vm431_vm1, %v1533_v18  ;;  %v1769_v18 = vld [vmem:[%s3534_s9 + $0x18] sm:$0xff] }
 0x392   : > { %2007 = vmatprep.mubr.f32.mxu0 %v3321_v2  ;;  %2232 = vmatpush1.bf16.msra.mxu0 %v2231_v33 }
 0x393   : > { %2234 = vmatprep.subr.bf16.mxu0 %v2233_v22 }
 0x396   : > { %2236 = vmatpush1.bf16.msra.mxu0 %v2235_v14 }
 0x399   : > { %2158 = vmatmul.mubr.msk.f32.vlgmr.msra.gmra.mrb[10].mxu0 %vm431_vm1, %v1766_v0 }
 0x39a   : > { %2013 = vmatprep.mubr.f32.mxu0 %v3321_v2 }
 0x39d   : > { %2159 = vmatmul.mubr.msk.f32.gmra.mrb[12].mxu0 %vm431_vm1, %v1767_v9 }
 0x39e   : > { %2019 = vmatprep.mubr.f32.mxu0 %v3321_v2 }
 0x3a1   : > { %2160 = vmatmul.mubr.msk.f32.gmra.mrb[14].mxu0 %vm431_vm1, %v1768_v43 }
 0x3a2   : > { %2025 = vmatprep.mubr.f32.mxu0 %v3321_v2 }
 0x3a5   : > { %2161 = vmatmul.mubr.msk.f32.gmra.mrb[16].mxu0 %vm431_vm1, %v1769_v18 }
 0x3a6   : > { %2031 = vmatprep.mubr.f32.mxu0 %v3321_v2 }
 0x3a9   : > { %2162 = vmatmul.mubr.msk.f32.gmra.mrb[18].mxu0 %vm431_vm1, %v1770_v49 }
 0x3aa   : > { %2037 = vmatprep.mubr.f32.mxu0 %v3321_v2 }
 0x464   : > { %v1603_v57 = vpop.f32.mrb[8].mxu0 }
 0x465   : > { %v1607_v11 = vmax.f32 %v1603_v57, 0.0  ;;  %v2190_v48 = vpop.f32.mrb[9].mxu0  ;;  %v1771_v57 = vld [vmem:[%s3534_s9 + $0x28] sm:$0xff] }
 0x466   : > { %2163 = vmatmul.mubr.msk.f32.gmra.mrb[20].mxu0 %vm431_vm1, %v1771_v57  ;;  %v1773_v48 = vld [vmem:[%s3534_s9 + $0x38] sm:$0xff] }
 0x467   : > { %2191 = vmatprep.subr.msk.mxu1 %vm1625_vm15, %v1607_v11  ;;  %2043 = vmatprep.mubr.f32.mxu0 %v3321_v2 }
 0x468   : > { %2192 = vmatpush3.msk.msra.mxu1 %vm1625_vm15, %v1607_v11  ;;  %v1772_v11 = vld [vmem:[%s3534_s9 + $0x30] sm:$0xff] }
 0x469   : > { %2194 = vmatmul.mubr.msk.f32.vlgmr.msra.gmra.mrb[8].mxu1 %vm1612_vm14, %v1609_v39 }
 0x46a   : > { %2196 = vmatprep.mubr.msk.f32.mxu1 %vm1612_vm14, %v1610_v44  ;;  %2164 = vmatmul.mubr.msk.f32.gmra.mrb[22].mxu0 %vm431_vm1, %v1772_v11 }
 0x46b   : > { %2049 = vmatprep.mubr.f32.mxu0 %v3321_v2 }
 0x46d   : > { %2197 = vmatmul.mubr.msk.f32.gmra.mrb[10].mxu1 %vm1612_vm14, %v1611_v41 }
 0x46e   : > { %1870 = vmatprep.mubr.f32.mxu1 %v3321_v2  ;;  %2165 = vmatmul.mubr.msk.f32.gmra.mrb[24].mxu0 %vm431_vm1, %v1773_v48 }
 0x53c   : > { %v2195_v10 = vpop.f32.mrb[8].mxu1 }
 0x53d   : > { %v1715_v30 = vsub.f32 0.0, %v2195_v10  ;;  %v1695_v34 = vpop.f32.mrb[9].mxu1 }
 0x53e   : > { %v1714_v52 = vsub.f32 0.0, %v1695_v34 }
 0x53f   : > { %v1720_v21 = vmul.f32 1.442695, %v1715_v30 }
 0x540   : > { %v1718_v4 = vmul.f32 1.442695, %v1714_v52  ;;  %v2198_v24 = vpop.f32.mrb[10].mxu1 }
 0x541   : > { %2337 = vpow2.f32 %v1720_v21  ;;  %v1717_v28 = vsub.f32 0.0, %v2198_v24  ;;  %v1705_v46 = vpop.f32.mrb[11].mxu1 }
 0x542   : > { %2339 = vpow2.f32 %v1718_v4  ;;  %v1716_v25 = vsub.f32 0.0, %v1705_v46 }
 0x543   : > { %v1724_v35 = vmul.f32 1.442695, %v1717_v28 }
 0x544   : > { %v1722_v23 = vmul.f32 1.442695, %v1716_v25 }
 0x545   : > { %2341 = vpow2.f32 %v1724_v35 }
 0x546   : > { %2343 = vpow2.f32 %v1722_v23 }
 0x54b   : > { %v2338_v37 = vpop.eup %2337 }
 0x54c   : > { %v2340_v38 = vpop.eup %2339  ;;  %v1727_v12 = vadd.f32 1.0, %v2338_v37 }
 0x54d   : > { %v1726_v7 = vadd.f32 1.0, %v2340_v38 }
 0x54e   : > { %2345 = vrcp.f32 %v1727_v12 }
 0x54f   : > { %v2342_v5 = vpop.eup %2341  ;;  %2347 = vrcp.f32 %v1726_v7 }
 0x550   : > { %v2344_v56 = vpop.eup %2343  ;;  %v1729_v62 = vadd.f32 1.0, %v2342_v5 }
 0x551   : > { %v1728_v54 = vadd.f32 1.0, %v2344_v56 }
 0x553   : > { %2349 = vrcp.f32 %v1728_v54 }
 0x554   : > { %2351 = vrcp.f32 %v1729_v62 }
 0x558   : > { %v2346_v55 = vpop.eup %2345 }
 0x559   : > { %v2348_v63 = vpop.eup %2347  ;;  %1745 = vperm.xlu0 %2335, %v2346_v55  }
 0x55a   : > { %1740 = vperm.xlu1 %2336, %v2348_v63  }
 0x55d   : > { %v2350_v60 = vpop.eup %2349 }
 0x55e   : > { %1750 = vperm.xlu1 %2336, %v2350_v60   ;;  %v2352_v19 = vpop.eup %2351 }
 0x562   : > { %1755 = vperm.xlu1 %2336, %v2352_v19  }
 0x5d8   : > { %v1746_v39 = vpop.permute.xlu0 %1745 }
 0x5d9   : > { %v1760_v44 = vmul.f32 %v1746_v39, %v1511_v58  ;;  %v1761_v41 = vmul.f32 %v1746_v39, %v1512_v51  ;;  %v1741_v10 = vpop.permute.xlu1 %1740  ;;  %v1775_v51 = vld [vmem:[%s3535_s10 + $0x8] sm:$0xff] }
 0x5da   : > { %v1758_v30 = vmul.f32 %v1741_v10, %v1509_v42  ;;  %v1759_v34 = vmul.f32 %v1741_v10, %v1510_v32  ;;  %v1774_v32 = vld [vmem:[%s3535_s10] sm:$0xff] }
 0x5dc   : > { %v2221_v52 = vpack.c.bf16 %v1761_v41, %v1759_v34  ;;  %v2223_v21 = vpack.c.bf16 %v1760_v44, %v1758_v30 }
 0x5dd   : > { %v1751_v4 = vpop.permute.xlu1 %1750 }
 0x5de   : > { %2222 = vmatprep.subr.bf16.mxu1 %v2221_v52  ;;  %v1762_v3 = vmul.f32 %v1751_v4, %v1513_v36  ;;  %v1763_v20 = vmul.f32 %v1751_v4, %v1514_v27  ;;  %v1778_v36 = vld [vmem:[%s3535_s10 + $0x20] sm:$0xff]  ;;  %v1779_v27 = vld [vmem:[%s3535_s10 + $0x28] sm:$0xff] }
 0x5df   : > { %2224 = vmatpush1.bf16.msra.mxu1 %v2223_v21 }
 0x5e1   : > { %v1756_v24 = vpop.permute.xlu1 %1755 }
 0x5e2   : > { %v1764_v58 = vmul.f32 %v1756_v24, %v1515_v17  ;;  %v1765_v50 = vmul.f32 %v1756_v24, %v1516_v15  ;;  %v2009_v17 = vpop.f32.mrb[10].mxu0 }
 0x5e3   : > { %v2011_v15 = vpop.f32.mrb[11].mxu0 }
 0x5e4   : > { %v2225_v6 = vpack.c.bf16 %v1765_v50, %v1763_v20  ;;  %v2227_v42 = vpack.c.bf16 %v1764_v58, %v1762_v3  ;;  %v2015_v28 = vpop.f32.mrb[12].mxu0 }
 0x5e5   : > { %v2017_v46 = vpop.f32.mrb[13].mxu0 }
 0x5e6   : > { %2226 = vmatprep.subr.bf16.mxu1 %v2225_v6  ;;  %v2021_v25 = vpop.f32.mrb[14].mxu0 }
 0x5e7   : > { %2228 = vmatpush1.bf16.msra.mxu1 %v2227_v42  ;;  %v2023_v35 = vpop.f32.mrb[15].mxu0 }
 0x5e8   : > { %v2027_v23 = vpop.f32.mrb[16].mxu0 }
 0x5e9   : > { %v2029_v37 = vpop.f32.mrb[17].mxu0 }
 0x5ea   : > { %2150 = vmatmul.mubr.msk.f32.vlgmr.msra.gmra.mrb[12].mxu1 %vm431_vm1, %v1774_v32  ;;  %v2033_v38 = vpop.f32.mrb[18].mxu0 }
 0x5eb   : > { %1876 = vmatprep.mubr.f32.mxu1 %v3321_v2  ;;  %v2035_v12 = vpop.f32.mrb[19].mxu0 }
 0x5ec   : > { %v2039_v7 = vpop.f32.mrb[20].mxu0 }
 0x5ed   : > { %v2041_v5 = vpop.f32.mrb[21].mxu0 }
 0x5ee   : > { %2151 = vmatmul.mubr.msk.f32.gmra.mrb[14].mxu1 %vm431_vm1, %v1775_v51 }
 0x5ef   : > { %1882 = vmatprep.mubr.f32.mxu1 %v3321_v2 }
 0x5f2   : > { %2152 = vmatmul.mubr.msk.f32.gmra.mrb[16].mxu1 %vm431_vm1, %v1776_v26 }
 0x5f3   : > { %1888 = vmatprep.mubr.f32.mxu1 %v3321_v2 }
 0x5f6   : > { %2153 = vmatmul.mubr.msk.f32.gmra.mrb[18].mxu1 %vm431_vm1, %v1777_v40 }
 0x5f7   : > { %1894 = vmatprep.mubr.f32.mxu1 %v3321_v2 }
 0x5fa   : > { %2154 = vmatmul.mubr.msk.f32.gmra.mrb[20].mxu1 %vm431_vm1, %v1778_v36 }
 0x5fb   : > { %1900 = vmatprep.mubr.f32.mxu1 %v3321_v2 }
 0x5fe   : > { %2155 = vmatmul.mubr.msk.f32.gmra.mrb[22].mxu1 %vm431_vm1, %v1779_v27 }
 0x5ff   : > { %1906 = vmatprep.mubr.f32.mxu1 %v3321_v2 }
 0x602   : > { %2156 = vmatmul.mubr.msk.f32.gmra.mrb[24].mxu1 %vm431_vm1, %v1780_v61 }
 0x603   : > { %1912 = vmatprep.mubr.f32.mxu1 %v3321_v2  ;;  %v2045_v2 = vpop.f32.mrb[22].mxu0 }
 0x604   : > { %v2047_v56 = vpop.f32.mrb[23].mxu0 }
 0x605   : > { %v2051_v54 = vpop.f32.mrb[24].mxu0 }
 0x606   : > { %2157 = vmatmul.mubr.msk.f32.gmra.mrb[26].mxu1 %vm431_vm1, %v1781_v47  ;;  %v2053_v62 = vpop.f32.mrb[25].mxu0 }
 0x6bd   : > { %v1872_v55 = vpop.f32.mrb[12].mxu1 }
 0x6be   : > { %v2010_v63 = vadd.f32 %v2009_v17, %v1872_v55  ;;  %v1874_v60 = vpop.f32.mrb[13].mxu1 }
 0x6bf   : > { %v2012_v53 = vadd.f32 %v2011_v15, %v1874_v60 }
 0x6c0   : > { %2056 = vst [vmem:[%s3504_s29] sm:$0xff] %v2010_v63 }
 0x6c1   : > { %2057 = vst [vmem:[%s3504_s29 + $0x8] sm:$0xff] %v2012_v53  ;;  %v1878_v45 = vpop.f32.mrb[14].mxu1 }
 0x6c2   : > { %v2016_v19 = vadd.f32 %v2015_v28, %v1878_v45  ;;  %v1880_v13 = vpop.f32.mrb[15].mxu1 }
 0x6c3   : > { %v2018_v8 = vadd.f32 %v2017_v46, %v1880_v13 }
 0x6c4   : > { %2058 = vst [vmem:[%s3504_s29 + $0x10] sm:$0xff] %v2016_v19 }
 0x6c5   : > { %2059 = vst [vmem:[%s3504_s29 + $0x18] sm:$0xff] %v2018_v8  ;;  %v1884_v31 = vpop.f32.mrb[16].mxu1 }
 0x6c6   : > { %v2022_v33 = vadd.f32 %v2021_v25, %v1884_v31  ;;  %v1886_v16 = vpop.f32.mrb[17].mxu1 }
 0x6c7   : > { %v2024_v29 = vadd.f32 %v2023_v35, %v1886_v16 }
 0x6c8   : > { %2060 = vst [vmem:[%s3504_s29 + $0x20] sm:$0xff] %v2022_v33 }
 0x6c9   : > { %2061 = vst [vmem:[%s3504_s29 + $0x28] sm:$0xff] %v2024_v29  ;;  %v1890_v22 = vpop.f32.mrb[18].mxu1 }
 0x6ca   : > { %v2028_v1 = vadd.f32 %v2027_v23, %v1890_v22  ;;  %v1892_v59 = vpop.f32.mrb[19].mxu1 }
 0x6cb   : > { %v2030_v14 = vadd.f32 %v2029_v37, %v1892_v59 }
 0x6cc   : > { %2062 = vst [vmem:[%s3504_s29 + $0x30] sm:$0xff] %v2028_v1 }
 0x6cd   : > { %2063 = vst [vmem:[%s3504_s29 + $0x38] sm:$0xff] %v2030_v14  ;;  %v1896_v0 = vpop.f32.mrb[20].mxu1 }
 0x6ce   : > { %v2034_v9 = vadd.f32 %v2033_v38, %v1896_v0  ;;  %v1898_v43 = vpop.f32.mrb[21].mxu1 }
 0x6cf   : > { %v2036_v18 = vadd.f32 %v2035_v12, %v1898_v43 }
 0x6d0   : > { %2064 = vst [vmem:[%s3504_s29 + $0x40] sm:$0xff] %v2034_v9 }
 0x6d1   : > { %2065 = vst [vmem:[%s3504_s29 + $0x48] sm:$0xff] %v2036_v18  ;;  %v1902_v49 = vpop.f32.mrb[22].mxu1 }
 0x6d2   : > { %v2040_v57 = vadd.f32 %v2039_v7, %v1902_v49  ;;  %v1904_v11 = vpop.f32.mrb[23].mxu1 }
 0x6d3   : > { %v2042_v48 = vadd.f32 %v2041_v5, %v1904_v11 }
 0x6d4   : > { %2066 = vst [vmem:[%s3504_s29 + $0x50] sm:$0xff] %v2040_v57 }
 0x6d5   : > { %2067 = vst [vmem:[%s3504_s29 + $0x58] sm:$0xff] %v2042_v48  ;;  %v1908_v39 = vpop.f32.mrb[24].mxu1 }
 0x6d6   : > { %v2046_v44 = vadd.f32 %v2045_v2, %v1908_v39  ;;  %v1910_v41 = vpop.f32.mrb[25].mxu1 }
 0x6d7   : > { %v2048_v10 = vadd.f32 %v2047_v56, %v1910_v41 }
 0x6d8   : > { %2068 = vst [vmem:[%s3504_s29 + $0x60] sm:$0xff] %v2046_v44 }
 0x6d9   : > { %2069 = vst [vmem:[%s3504_s29 + $0x68] sm:$0xff] %v2048_v10  ;;  %v1914_v30 = vpop.f32.mrb[26].mxu1 }
 0x6da   : > { %v2052_v34 = vadd.f32 %v2051_v54, %v1914_v30  ;;  %v1916_v52 = vpop.f32.mrb[27].mxu1 }
 0x6db   : > { %v2054_v21 = vadd.f32 %v2053_v62, %v1916_v52 }
 0x6dc   : > { %2070 = vst [vmem:[%s3504_s29 + $0x70] sm:$0xff] %v2052_v34 }
 0x6dd   : > { %2071 = vst [vmem:[%s3504_s29 + $0x78] sm:$0xff] %v2054_v21 }
 0x6de PF: > { %s21_s17 = sadd.s32 1, %s2360_s17  }
 0x6df   : > { %p18_p4 = scmp.ge.s32.totalorder %s21_s17, 4  }
 0x6e1   :  { %20 = sbr.rel (!%p18_p4) target bundleno = 1 (0x1), region = 94 }

</bundles_post_ra>
